<compile_context>
chip_gen: v6e
topology: v6e:2x2x1
jax: 0.10.0
libtpu: 0.0.40
codegen_flags: <defaults>
</compile_context>

<pallas_src>
import functools

import jax
import jax.numpy as jnp
from jax.experimental import pallas as pl
from jax.experimental.pallas import tpu as pltpu


# ---------------------------------------------------------------------------
# Kernel
# ---------------------------------------------------------------------------
def _upsample_phase_kernel(x_ref, w_ref, b_ref, o_ref):
    # x_ref: (td+1, H+1, W+1, Cin)  bf16  depth tile + 1-plane high-side halo (overlapped)
    # w_ref: (8, Cin, 8*CoutP)      bf16  tap-major polyphase weights (BN scale folded in)
    # b_ref: (1, 8*CoutP)           f32   phase-stacked bias (conv bias + BN folded)
    # o_ref: (td, H, W, 8*CoutP)    f32   phase-stacked output (lane-dense last dim)
    td, h, w, cout8 = o_ref.shape
    cin = x_ref.shape[-1]
    m = td * h * w

    # 2x2x2 tap offsets -> 8 accumulated matmuls; accumulation stays in f32.
    acc = None
    tap = 0
    for dd in range(2):
        for dh in range(2):
            for dw in range(2):
                xs = x_ref[dd:dd + td, dh:dh + h, dw:dw + w, :].reshape(m, cin)
                part = jnp.dot(xs, w_ref[tap], preferred_element_type=jnp.float32)
                acc = part if acc is None else acc + part
                tap += 1

    y = jnp.maximum(acc + b_ref[...], 0.0)                         # bias + ReLU in f32
    o_ref[...] = y.reshape(td, h, w, cout8).astype(o_ref.dtype)


# ---------------------------------------------------------------------------
# VMEM accounting / tile picking (lane & sublane padding aware)
# ---------------------------------------------------------------------------
def _round_up(x, m):
    return (x + m - 1) // m * m


def _block_vmem_bytes(shape, itemsize):
    """VMEM bytes of a block, accounting for (sublane, lane) padding of last 2 dims."""
    lead = 1
    for s in shape[:-2]:
        lead *= s
    sublane = 8 * (4 // itemsize)            # 8 rows for f32, 16 for bf16
    return lead * _round_up(shape[-2], sublane) * _round_up(shape[-1], 128) * itemsize


def _working_set_bytes(td, H, W, cin, coutp):
    hp, wp, c8 = H + 1, W + 1, 8 * coutp
    m = td * H * W
    in_b = _block_vmem_bytes((td + 1, hp, wp, cin), 2)       # bf16, double-buffered
    out_b = _block_vmem_bytes((td, H, W, c8), 4)             # f32,  double-buffered
    w_b = _block_vmem_bytes((8, cin, c8), 2)                 # bf16, single-buffered
    b_b = _block_vmem_bytes((1, c8), 4)
    acc_b = _block_vmem_bytes((m, c8), 4)                    # f32 accumulator / epilogue
    sl_b = _block_vmem_bytes((m, cin), 2)                    # one materialized tap slice
    return 2 * in_b + 2 * out_b + w_b + b_b + 2 * acc_b + 2 * sl_b


def _pick_tile_d(N, D, H, W, cin, coutp, budget_bytes):
    fitting = [td for td in range(1, D + 1)
               if D % td == 0
               and _working_set_bytes(td, H, W, cin, coutp) <= budget_bytes]
    if not fitting:
        fitting = [1]
    best = max(fitting)
    # v7x megacore: prefer an even total grid (>= 2) if it costs at most 2x granularity.
    even = [td for td in fitting if (N * (D // td)) % 2 == 0 and N * (D // td) >= 2]
    if even and 2 * max(even) >= best:
        return max(even)
    return best


# ---------------------------------------------------------------------------
# Wrapper
# ---------------------------------------------------------------------------
def upsample_forward(x, wt, b_conv, gamma, beta, run_mean, run_var,
                     eps=1e-5, tile_d=None):
    """x: (N, Cin, D, H, W) float32 (PyTorch NCDHW). Returns (N, Cout, 2D, 2H, 2W) f32."""
    N, Cin, D, H, W = x.shape
    Cout = wt.shape[1]
    OD, OH, OW = 2 * D, 2 * H, 2 * W
    Hp, Wp = H + 1, W + 1

    # Fold BatchNorm3d (inference, running stats) into the conv weights / bias, in f32.
    # TODO(synk): training-mode BatchNorm3d (batch statistics) is not reproduced here.
    scale = gamma / jnp.sqrt(run_var + eps)                         # (Cout,)
    bias = beta + (b_conv - run_mean) * scale                       # (Cout,)
    w_scaled = wt * scale[None, :, None, None, None]                # (Cin, Cout, 3,3,3)

    # Polyphase (sub-pixel) weights, tap-major: (8 taps, Cin, 8 phases * CoutP).
    # Output parity p vs input offset delta:  p=0: delta0 -> k=1
    #                                         p=1: delta0 -> k=2 ; delta1 -> k=0
    CoutP = _round_up(Cout, 16)                                     # 8*CoutP multiple of 128
    kmap = {(0, 0): 1, (1, 0): 2, (1, 1): 0}
    w_taps = jnp.zeros((8, Cin, 8 * CoutP), jnp.float32)
    for pd in range(2):
        for ph in range(2):
            for pw in range(2):
                phase = (pd * 2 + ph) * 2 + pw
                for dd in range(2):
                    for dh in range(2):
                        for dw in range(2):
                            kd = kmap.get((pd, dd))
                            kh = kmap.get((ph, dh))
                            kw = kmap.get((pw, dw))
                            if kd is None or kh is None or kw is None:
                                continue
                            tap = (dd * 2 + dh) * 2 + dw
                            w_taps = w_taps.at[
                                tap, :, phase * CoutP: phase * CoutP + Cout].set(
                                    w_scaled[:, :, kd, kh, kw])
    w_taps = w_taps.astype(jnp.bfloat16)

    bias_p = jnp.zeros((CoutP,), jnp.float32).at[:Cout].set(bias)
    bias8 = jnp.tile(bias_p, 8).reshape(1, 8 * CoutP)

    # Channels-last bf16 input, one plane of zero padding on the high side of each dim.
    x_cl = jnp.transpose(x, (0, 2, 3, 4, 1)).astype(jnp.bfloat16)   # (N, D, H, W, Cin)
    xp = jnp.pad(x_cl, ((0, 0), (0, 1), (0, 1), (0, 1), (0, 0)))    # (N, D+1, Hp, Wp, Cin)

    # Generation-aware VMEM budget (v7x: 64 MiB, v5e/v6e: 128 MiB physical).
    try:
        vmem_cap = int(pltpu.get_tpu_info().vmem_capacity_bytes)
    except Exception:                                               # pragma: no cover
        vmem_cap = 64 * 1024 * 1024
    budget = int(0.40 * vmem_cap)
    vmem_limit = int(0.65 * vmem_cap)

    if tile_d is None:
        td = _pick_tile_d(N, D, H, W, Cin, CoutP, budget)
    else:
        assert D % tile_d == 0, "tile_d must divide D"
        td = tile_d
    n_dt = D // td
    G = N * n_dt

    # Overlapping depth tiles (tile + 1-plane halo) built host-side: one BlockSpec per
    # grid step, no in-kernel halo concatenation.
    if n_dt == 1:
        x_tiles = xp                                                # (N, D+1, Hp, Wp, Cin)
    else:
        slabs = [jax.lax.slice_in_dim(xp, t * td, t * td + td + 1, axis=1)
                 for t in range(n_dt)]
        x_tiles = jnp.stack(slabs, axis=1).reshape(G, td + 1, Hp, Wp, Cin)

    flops = 2 * N * D * H * W * Cin * 8 * (8 * CoutP)               # actual MXU work issued
    bytes_accessed = (x_tiles.size * 2 + w_taps.size * 2 + bias8.size * 4
                      + G * td * H * W * 8 * CoutP * 4)

    out = pl.pallas_call(
        _upsample_phase_kernel,
        out_shape=jax.ShapeDtypeStruct((G, td, H, W, 8 * CoutP), jnp.float32),
        grid=(G,),
        in_specs=[
            # main depth tile (with halo); leading grid dim squeezed out of the kernel ref
            pl.BlockSpec((None, td + 1, Hp, Wp, Cin), lambda g: (g, 0, 0, 0, 0)),
            # invariant operands: whole-array in VMEM, single-buffered, fetched once
            pl.BlockSpec(memory_space=pltpu.MemorySpace.VMEM),      # weights
            pl.BlockSpec(memory_space=pltpu.MemorySpace.VMEM),      # bias
        ],
        out_specs=pl.BlockSpec((None, td, H, W, 8 * CoutP), lambda g: (g, 0, 0, 0, 0)),
        compiler_params=pltpu.CompilerParams(
            dimension_semantics=("parallel",),
            vmem_limit_bytes=vmem_limit,
        ),
        cost_estimate=pl.CostEstimate(
            flops=flops, transcendentals=0, bytes_accessed=bytes_accessed),
    )(x_tiles, w_taps, bias8)

    # De-interleave the 8 phases: slice channels first, then a SINGLE transpose to NCDHW.
    y = out.reshape(N, D, H, W, 2, 2, 2, CoutP)[..., :Cout]         # (N,D,H,W,pd,ph,pw,C)
    y = jnp.transpose(y, (0, 7, 1, 4, 2, 5, 3, 6))                  # (N,C,D,pd,H,ph,W,pw)
    return y.reshape(N, Cout, OD, OH, OW)


# ---------------------------------------------------------------------------
# Pure-JAX reference (lax conv) for correctness checking
# ---------------------------------------------------------------------------
def _reference(x, wt, b_conv, gamma, beta, run_mean, run_var, eps=1e-5):
    Cout = wt.shape[1]
    w_fwd = jnp.transpose(jnp.flip(wt, axis=(2, 3, 4)), (1, 0, 2, 3, 4))  # (Cout,Cin,3,3,3)
    dn = jax.lax.conv_dimension_numbers(x.shape, w_fwd.shape, ("NCDHW", "OIDHW", "NCDHW"))
    y = jax.lax.conv_general_dilated(
        x, w_fwd, window_strides=(1, 1, 1), padding=((1, 2), (1, 2), (1, 2)),
        lhs_dilation=(2, 2, 2), dimension_numbers=dn,
        precision=jax.lax.Precision.HIGHEST)
    y = y + b_conv.reshape(1, Cout, 1, 1, 1)
    inv = 1.0 / jnp.sqrt(run_var + eps)
    y = (y - run_mean.reshape(1, Cout, 1, 1, 1)) * (gamma * inv).reshape(1, Cout, 1, 1, 1) \
        + beta.reshape(1, Cout, 1, 1, 1)
    return jnp.maximum(y, 0.0)


if __name__ == "__main__":
    key = jax.random.PRNGKey(0)
    N, Cin, Cout, S = 2, 4, 8, 4

    k_x, k_w, k_b, k_g, k_be, k_m, k_v = jax.random.split(key, 7)
    x = jax.random.normal(k_x, (N, Cin, S, S, S), jnp.float32)
    # ConvTranspose3d weight shape: (in_channels, out_channels, kD, kH, kW)
    wt = 0.1 * jax.random.normal(k_w, (Cin, Cout, 3, 3, 3), jnp.float32)
    b_conv = 0.1 * jax.random.normal(k_b, (Cout,), jnp.float32)
    gamma = 1.0 + 0.1 * jax.random.normal(k_g, (Cout,), jnp.float32)
    beta = 0.1 * jax.random.normal(k_be, (Cout,), jnp.float32)
    run_mean = 0.1 * jax.random.normal(k_m, (Cout,), jnp.float32)
    run_var = jnp.abs(1.0 + 0.1 * jax.random.normal(k_v, (Cout,), jnp.float32))

    ref = _reference(x, wt, b_conv, gamma, beta, run_mean, run_var)

    # default (auto-chosen) depth tile
    out = jax.jit(upsample_forward)(x, wt, b_conv, gamma, beta, run_mean, run_var)
    out = jax.block_until_ready(out)
    assert out.shape == (N, Cout, 2 * S, 2 * S, 2 * S), out.shape
    assert jnp.allclose(out, ref, atol=2e-2, rtol=2e-2), float(jnp.max(jnp.abs(out - ref)))

    # explicitly exercise the depth-tiled (overlapping-halo) path: 2 tiles along depth
    out_t = jax.jit(functools.partial(upsample_forward, tile_d=2))(
        x, wt, b_conv, gamma, beta, run_mean, run_var)
    out_t = jax.block_until_ready(out_t)
    assert jnp.allclose(out_t, ref, atol=2e-2, rtol=2e-2), \
        float(jnp.max(jnp.abs(out_t - ref)))

    print("KERNEL_OK")
</pallas_src>

<mosaic_0001>
module attributes {stable_mosaic.version = 11 : i64} {
  func.func @_upsample_phase_kernel(%arg0: i32, %arg1: memref<1x5x5x5x4xbf16, #tpu.memory_space<vmem>>, %arg2: memref<8x4x128xbf16, #tpu.memory_space<vmem>>, %arg3: memref<1x128xf32, #tpu.memory_space<vmem>>, %arg4: memref<1x4x4x4x128xf32, #tpu.memory_space<vmem>>) attributes {dimension_semantics = [#tpu.dimension_semantics<parallel>], iteration_bounds = array<i64: 2>, scalar_prefetch = 0 : i64, scratch_operands = 0 : i64, tpu.core_type = #tpu.core_type<tc>, window_params = [{transform_indices = @transform_0, window_bounds = array<i64: 1, 5, 5, 5, 4>}, {pipeline_mode = #tpu.pipeline_mode<synchronous>, transform_indices = @transform_1, window_bounds = array<i64: 8, 4, 128>}, {pipeline_mode = #tpu.pipeline_mode<synchronous>, transform_indices = @transform_2, window_bounds = array<i64: 1, 128>}, {transform_indices = @transform_3, window_bounds = array<i64: 1, 4, 4, 4, 128>}]} {
    %c0 = arith.constant 0 : index
    %c0_0 = arith.constant 0 : index
    %c0_1 = arith.constant 0 : index
    %c0_2 = arith.constant 0 : index
    %c0_3 = arith.constant 0 : index
    %0 = vector.load %arg1[%c0, %c0_0, %c0_1, %c0_2, %c0_3] : memref<1x5x5x5x4xbf16, #tpu.memory_space<vmem>>, vector<1x4x4x4x4xbf16>
    %1 = vector.shape_cast %0 : vector<1x4x4x4x4xbf16> to vector<4x4x4x4xbf16>
    %2 = vector.shape_cast %1 : vector<4x4x4x4xbf16> to vector<64x4xbf16>
    %c0_4 = arith.constant 0 : index
    %c0_5 = arith.constant 0 : index
    %c0_6 = arith.constant 0 : index
    %3 = vector.load %arg2[%c0_4, %c0_5, %c0_6] : memref<8x4x128xbf16, #tpu.memory_space<vmem>>, vector<1x4x128xbf16>
    %4 = vector.shape_cast %3 : vector<1x4x128xbf16> to vector<4x128xbf16>
    %cst = arith.constant dense<0.000000e+00> : vector<64x128xf32>
    %5 = tpu.matmul %2, %4, %cst {dimension_numbers = #tpu.dot_dimension_numbers<[1], [0], [0], [1], [0, 0, 1, 1], [], []>} : vector<64x4xbf16>, vector<4x128xbf16>, vector<64x128xf32> -> vector<64x128xf32>
    %c0_7 = arith.constant 0 : index
    %c0_8 = arith.constant 0 : index
    %c0_9 = arith.constant 0 : index
    %c1 = arith.constant 1 : index
    %c0_10 = arith.constant 0 : index
    %6 = vector.load %arg1[%c0_7, %c0_8, %c0_9, %c1, %c0_10] : memref<1x5x5x5x4xbf16, #tpu.memory_space<vmem>>, vector<1x4x4x4x4xbf16>
    %7 = vector.shape_cast %6 : vector<1x4x4x4x4xbf16> to vector<4x4x4x4xbf16>
    %8 = vector.shape_cast %7 : vector<4x4x4x4xbf16> to vector<64x4xbf16>
    %c1_11 = arith.constant 1 : index
    %c0_12 = arith.constant 0 : index
    %c0_13 = arith.constant 0 : index
    %9 = vector.load %arg2[%c1_11, %c0_12, %c0_13] : memref<8x4x128xbf16, #tpu.memory_space<vmem>>, vector<1x4x128xbf16>
    %10 = vector.shape_cast %9 : vector<1x4x128xbf16> to vector<4x128xbf16>
    %cst_14 = arith.constant dense<0.000000e+00> : vector<64x128xf32>
    %11 = tpu.matmul %8, %10, %cst_14 {dimension_numbers = #tpu.dot_dimension_numbers<[1], [0], [0], [1], [0, 0, 1, 1], [], []>} : vector<64x4xbf16>, vector<4x128xbf16>, vector<64x128xf32> -> vector<64x128xf32>
    %12 = arith.addf %5, %11 : vector<64x128xf32>
    %c0_15 = arith.constant 0 : index
    %c0_16 = arith.constant 0 : index
    %c1_17 = arith.constant 1 : index
    %c0_18 = arith.constant 0 : index
    %c0_19 = arith.constant 0 : index
    %13 = vector.load %arg1[%c0_15, %c0_16, %c1_17, %c0_18, %c0_19] : memref<1x5x5x5x4xbf16, #tpu.memory_space<vmem>>, vector<1x4x4x4x4xbf16>
    %14 = vector.shape_cast %13 : vector<1x4x4x4x4xbf16> to vector<4x4x4x4xbf16>
    %15 = vector.shape_cast %14 : vector<4x4x4x4xbf16> to vector<64x4xbf16>
    %c2 = arith.constant 2 : index
    %c0_20 = arith.constant 0 : index
    %c0_21 = arith.constant 0 : index
    %16 = vector.load %arg2[%c2, %c0_20, %c0_21] : memref<8x4x128xbf16, #tpu.memory_space<vmem>>, vector<1x4x128xbf16>
    %17 = vector.shape_cast %16 : vector<1x4x128xbf16> to vector<4x128xbf16>
    %cst_22 = arith.constant dense<0.000000e+00> : vector<64x128xf32>
    %18 = tpu.matmul %15, %17, %cst_22 {dimension_numbers = #tpu.dot_dimension_numbers<[1], [0], [0], [1], [0, 0, 1, 1], [], []>} : vector<64x4xbf16>, vector<4x128xbf16>, vector<64x128xf32> -> vector<64x128xf32>
    %19 = arith.addf %12, %18 : vector<64x128xf32>
    %c0_23 = arith.constant 0 : index
    %c0_24 = arith.constant 0 : index
    %c1_25 = arith.constant 1 : index
    %c1_26 = arith.constant 1 : index
    %c0_27 = arith.constant 0 : index
    %20 = vector.load %arg1[%c0_23, %c0_24, %c1_25, %c1_26, %c0_27] : memref<1x5x5x5x4xbf16, #tpu.memory_space<vmem>>, vector<1x4x4x4x4xbf16>
    %21 = vector.shape_cast %20 : vector<1x4x4x4x4xbf16> to vector<4x4x4x4xbf16>
    %22 = vector.shape_cast %21 : vector<4x4x4x4xbf16> to vector<64x4xbf16>
    %c3 = arith.constant 3 : index
    %c0_28 = arith.constant 0 : index
    %c0_29 = arith.constant 0 : index
    %23 = vector.load %arg2[%c3, %c0_28, %c0_29] : memref<8x4x128xbf16, #tpu.memory_space<vmem>>, vector<1x4x128xbf16>
    %24 = vector.shape_cast %23 : vector<1x4x128xbf16> to vector<4x128xbf16>
    %cst_30 = arith.constant dense<0.000000e+00> : vector<64x128xf32>
    %25 = tpu.matmul %22, %24, %cst_30 {dimension_numbers = #tpu.dot_dimension_numbers<[1], [0], [0], [1], [0, 0, 1, 1], [], []>} : vector<64x4xbf16>, vector<4x128xbf16>, vector<64x128xf32> -> vector<64x128xf32>
    %26 = arith.addf %19, %25 : vector<64x128xf32>
    %c0_31 = arith.constant 0 : index
    %c1_32 = arith.constant 1 : index
    %c0_33 = arith.constant 0 : index
    %c0_34 = arith.constant 0 : index
    %c0_35 = arith.constant 0 : index
    %27 = vector.load %arg1[%c0_31, %c1_32, %c0_33, %c0_34, %c0_35] : memref<1x5x5x5x4xbf16, #tpu.memory_space<vmem>>, vector<1x4x4x4x4xbf16>
    %28 = vector.shape_cast %27 : vector<1x4x4x4x4xbf16> to vector<4x4x4x4xbf16>
    %29 = vector.shape_cast %28 : vector<4x4x4x4xbf16> to vector<64x4xbf16>
    %c4 = arith.constant 4 : index
    %c0_36 = arith.constant 0 : index
    %c0_37 = arith.constant 0 : index
    %30 = vector.load %arg2[%c4, %c0_36, %c0_37] : memref<8x4x128xbf16, #tpu.memory_space<vmem>>, vector<1x4x128xbf16>
    %31 = vector.shape_cast %30 : vector<1x4x128xbf16> to vector<4x128xbf16>
    %cst_38 = arith.constant dense<0.000000e+00> : vector<64x128xf32>
    %32 = tpu.matmul %29, %31, %cst_38 {dimension_numbers = #tpu.dot_dimension_numbers<[1], [0], [0], [1], [0, 0, 1, 1], [], []>} : vector<64x4xbf16>, vector<4x128xbf16>, vector<64x128xf32> -> vector<64x128xf32>
    %33 = arith.addf %26, %32 : vector<64x128xf32>
    %c0_39 = arith.constant 0 : index
    %c1_40 = arith.constant 1 : index
    %c0_41 = arith.constant 0 : index
    %c1_42 = arith.constant 1 : index
    %c0_43 = arith.constant 0 : index
    %34 = vector.load %arg1[%c0_39, %c1_40, %c0_41, %c1_42, %c0_43] : memref<1x5x5x5x4xbf16, #tpu.memory_space<vmem>>, vector<1x4x4x4x4xbf16>
    %35 = vector.shape_cast %34 : vector<1x4x4x4x4xbf16> to vector<4x4x4x4xbf16>
    %36 = vector.shape_cast %35 : vector<4x4x4x4xbf16> to vector<64x4xbf16>
    %c5 = arith.constant 5 : index
    %c0_44 = arith.constant 0 : index
    %c0_45 = arith.constant 0 : index
    %37 = vector.load %arg2[%c5, %c0_44, %c0_45] : memref<8x4x128xbf16, #tpu.memory_space<vmem>>, vector<1x4x128xbf16>
    %38 = vector.shape_cast %37 : vector<1x4x128xbf16> to vector<4x128xbf16>
    %cst_46 = arith.constant dense<0.000000e+00> : vector<64x128xf32>
    %39 = tpu.matmul %36, %38, %cst_46 {dimension_numbers = #tpu.dot_dimension_numbers<[1], [0], [0], [1], [0, 0, 1, 1], [], []>} : vector<64x4xbf16>, vector<4x128xbf16>, vector<64x128xf32> -> vector<64x128xf32>
    %40 = arith.addf %33, %39 : vector<64x128xf32>
    %c0_47 = arith.constant 0 : index
    %c1_48 = arith.constant 1 : index
    %c1_49 = arith.constant 1 : index
    %c0_50 = arith.constant 0 : index
    %c0_51 = arith.constant 0 : index
    %41 = vector.load %arg1[%c0_47, %c1_48, %c1_49, %c0_50, %c0_51] : memref<1x5x5x5x4xbf16, #tpu.memory_space<vmem>>, vector<1x4x4x4x4xbf16>
    %42 = vector.shape_cast %41 : vector<1x4x4x4x4xbf16> to vector<4x4x4x4xbf16>
    %43 = vector.shape_cast %42 : vector<4x4x4x4xbf16> to vector<64x4xbf16>
    %c6 = arith.constant 6 : index
    %c0_52 = arith.constant 0 : index
    %c0_53 = arith.constant 0 : index
    %44 = vector.load %arg2[%c6, %c0_52, %c0_53] : memref<8x4x128xbf16, #tpu.memory_space<vmem>>, vector<1x4x128xbf16>
    %45 = vector.shape_cast %44 : vector<1x4x128xbf16> to vector<4x128xbf16>
    %cst_54 = arith.constant dense<0.000000e+00> : vector<64x128xf32>
    %46 = tpu.matmul %43, %45, %cst_54 {dimension_numbers = #tpu.dot_dimension_numbers<[1], [0], [0], [1], [0, 0, 1, 1], [], []>} : vector<64x4xbf16>, vector<4x128xbf16>, vector<64x128xf32> -> vector<64x128xf32>
    %47 = arith.addf %40, %46 : vector<64x128xf32>
    %c0_55 = arith.constant 0 : index
    %c1_56 = arith.constant 1 : index
    %c1_57 = arith.constant 1 : index
    %c1_58 = arith.constant 1 : index
    %c0_59 = arith.constant 0 : index
    %48 = vector.load %arg1[%c0_55, %c1_56, %c1_57, %c1_58, %c0_59] : memref<1x5x5x5x4xbf16, #tpu.memory_space<vmem>>, vector<1x4x4x4x4xbf16>
    %49 = vector.shape_cast %48 : vector<1x4x4x4x4xbf16> to vector<4x4x4x4xbf16>
    %50 = vector.shape_cast %49 : vector<4x4x4x4xbf16> to vector<64x4xbf16>
    %c7 = arith.constant 7 : index
    %c0_60 = arith.constant 0 : index
    %c0_61 = arith.constant 0 : index
    %51 = vector.load %arg2[%c7, %c0_60, %c0_61] : memref<8x4x128xbf16, #tpu.memory_space<vmem>>, vector<1x4x128xbf16>
    %52 = vector.shape_cast %51 : vector<1x4x128xbf16> to vector<4x128xbf16>
    %cst_62 = arith.constant dense<0.000000e+00> : vector<64x128xf32>
    %53 = tpu.matmul %50, %52, %cst_62 {dimension_numbers = #tpu.dot_dimension_numbers<[1], [0], [0], [1], [0, 0, 1, 1], [], []>} : vector<64x4xbf16>, vector<4x128xbf16>, vector<64x128xf32> -> vector<64x128xf32>
    %54 = arith.addf %47, %53 : vector<64x128xf32>
    %c0_63 = arith.constant 0 : index
    %c0_64 = arith.constant 0 : index
    %55 = vector.load %arg3[%c0_63, %c0_64] : memref<1x128xf32, #tpu.memory_space<vmem>>, vector<1x128xf32>
    %56 = vector.broadcast %55 : vector<1x128xf32> to vector<64x128xf32>
    %57 = arith.addf %54, %56 : vector<64x128xf32>
    %cst_65 = arith.constant 0.000000e+00 : f32
    %58 = vector.broadcast %cst_65 : f32 to vector<64x128xf32>
    %59 = arith.maximumf %57, %58 : vector<64x128xf32>
    %60 = vector.shape_cast %59 : vector<64x128xf32> to vector<4x4x4x128xf32>
    %c0_66 = arith.constant 0 : index
    %c0_67 = arith.constant 0 : index
    %c0_68 = arith.constant 0 : index
    %c0_69 = arith.constant 0 : index
    %c0_70 = arith.constant 0 : index
    %61 = vector.load %arg4[%c0_66, %c0_67, %c0_68, %c0_69, %c0_70] : memref<1x4x4x4x128xf32, #tpu.memory_space<vmem>>, vector<1x4x4x4x128xf32>
    %62 = vector.shape_cast %61 : vector<1x4x4x4x128xf32> to vector<4x4x4x128xf32>
    %63 = vector.shape_cast %60 : vector<4x4x4x128xf32> to vector<1x4x4x4x128xf32>
    tpu.vector_store %arg4[%c0_66, %c0_67, %c0_68, %c0_69, %c0_70], %63 {strides = array<i32>} : memref<1x4x4x4x128xf32, #tpu.memory_space<vmem>>, vector<1x4x4x4x128xf32>,
    return
  }
  func.func @transform_0(%arg0: i32) -> (i32, i32, i32, i32, i32) {
    %c0_i32 = arith.constant 0 : i32
    %c0_i32_0 = arith.constant 0 : i32
    %c0_i32_1 = arith.constant 0 : i32
    %c0_i32_2 = arith.constant 0 : i32
    %c0_i32_3 = arith.constant 0 : i32
    return %arg0, %c0_i32, %c0_i32_0, %c0_i32_1, %c0_i32_2 : i32, i32, i32, i32, i32
  }
  func.func @transform_1(%arg0: i32) -> (i32, i32, i32) {
    %c0_i32 = arith.constant 0 : i32
    %c0_i32_0 = arith.constant 0 : i32
    %c0_i32_1 = arith.constant 0 : i32
    %c0_i32_2 = arith.constant 0 : i32
    return %c0_i32, %c0_i32_0, %c0_i32_1 : i32, i32, i32
  }
  func.func @transform_2(%arg0: i32) -> (i32, i32) {
    %c0_i32 = arith.constant 0 : i32
    %c0_i32_0 = arith.constant 0 : i32
    %c0_i32_1 = arith.constant 0 : i32
    return %c0_i32, %c0_i32_0 : i32, i32
  }
  func.func @transform_3(%arg0: i32) -> (i32, i32, i32, i32, i32) {
    %c0_i32 = arith.constant 0 : i32
    %c0_i32_0 = arith.constant 0 : i32
    %c0_i32_1 = arith.constant 0 : i32
    %c0_i32_2 = arith.constant 0 : i32
    %c0_i32_3 = arith.constant 0 : i32
    return %arg0, %c0_i32, %c0_i32_0, %c0_i32_1, %c0_i32_2 : i32, i32, i32, i32, i32
  }
}

</mosaic_0001>

<bundles_post_ra>
// kernel: tile.8
= control target key start
LH: loop header
LB: loop body
LE: loop exit
PB: predicated region body
PF: predicated region fallthrough
CT: control target
= control target key end

     0   :  { %s22_s0 = inlined_call_operand.vmem [shape: f32[16], index: 0, kind: input, shape index: {}]   ;;  %s23_s1 = inlined_call_operand.vmem [shape: f32[8,16], index: 1, kind: output, shape index: {}]  }
   0x1   :  { %v4_v0 = vld [vmem:[%s22_s0] ss:$0 sm:$0xff] }
   0x2   :  { %5 = vst [vmem:[%s23_s1] sm:$0xff] %v4_v0 }

// kernel: tile.9
= control target key start
LH: loop header
LB: loop body
LE: loop exit
PB: predicated region body
PF: predicated region fallthrough
CT: control target
= control target key end

     0   :  { %s69_s10 = smov 112   ;;  %s70_s11 = smov 80   ;;  %vm3_vm0 = vcmask 130048   ;;  %vm9_vm1 = vcmask 1048448   ;;  %vm15_vm2 = vcmask 917248   ;;  %vm21_vm3 = vcmask 786048   ;;  %s113_s0 = inlined_call_operand.vmem [shape: f32[8,16], index: 0, kind: input, shape index: {}]   ;;  %s114_s1 = inlined_call_operand.vmem [shape: f32[1,128], index: 1, kind: output, shape index: {}]  }
   0x1   :  { %v55_v0 = vld [vmem:[%s113_s0 + $0x7] sm:$0x1]   ;;  %v57_v1 = vld [vmem:[%s113_s0 + $0x5] sm:$0x1]   ;;  %v56_v2 = vld [vmem:[%s113_s0 + $0x6] sm:$0x1]  }
   0x2   :  { %7 = vrot.lane.b32.xlu0 %v55_v0, %s69_s10  ;;  %19 = vrot.lane.b32.xlu1 %v57_v1, %s70_s11  ;;  %v58_v3 = vld [vmem:[%s113_s0 + $0x4] sm:$0x1]   ;;  %v2_v4 = vld [vmem:[%s113_s0] sm:$0x1]   ;;  %s71_s18 = smov 96   ;;  %s72_s19 = smov 64  }
   0x3   :  { %4 = vst.msk [vmem:[#allocation0] sm:$0x1] %vm3_vm0, %v2_v4   ;;  %v59_v5 = vld [vmem:[%s113_s0 + $0x3] sm:$0x1]   ;;  %v60_v6 = vld [vmem:[%s113_s0 + $0x2] sm:$0x1]  }
   0x4   :  { %s73_s24 = smov 48   ;;  %s74_s25 = smov 32   ;;  %v61_v7 = vld [vmem:[%s113_s0 + $0x1] sm:$0x1]   ;;  %vm27_vm4 = vcmask 654848   ;;  %vm33_vm5 = vcmask 523648  }
   0x5   :  { %s75_s0 = smov 16   ;;  %vm39_vm6 = vcmask 392448   ;;  %vm45_vm7 = vcmask 261248  }
   0x6   :  { %13 = vrot.lane.b32.xlu0 %v56_v2, %s71_s18  ;;  %25 = vrot.lane.b32.xlu1 %v58_v3, %s72_s19 }
   0xa   :  { %31 = vrot.lane.b32.xlu0 %v59_v5, %s73_s24  ;;  %37 = vrot.lane.b32.xlu1 %v60_v6, %s74_s25 }
   0xe   :  { %43 = vrot.lane.b32.xlu0 %v61_v7, %s75_s0 }
  0x74   :  { %v8_v8 = vpop.permute.xlu0 %7   ;;  %v20_v9 = vpop.permute.xlu1 %19  }
  0x75   :  { %10 = vst.msk [vmem:[#allocation0] sm:$0x1] %vm9_vm1, %v8_v8  }
  0x78   :  { %v14_v10 = vpop.permute.xlu0 %13   ;;  %v26_v11 = vpop.permute.xlu1 %25  }
  0x79   :  { %16 = vst.msk [vmem:[#allocation0] sm:$0x1] %vm15_vm2, %v14_v10  }
  0x7a   :  { %22 = vst.msk [vmem:[#allocation0] sm:$0x1] %vm21_vm3, %v20_v9  }
  0x7b   :  { %28 = vst.msk [vmem:[#allocation0] sm:$0x1] %vm27_vm4, %v26_v11  }
  0x7c   :  { %v32_v12 = vpop.permute.xlu0 %31   ;;  %v38_v13 = vpop.permute.xlu1 %37  }
  0x7d   :  { %34 = vst.msk [vmem:[#allocation0] sm:$0x1] %vm33_vm5, %v32_v12  }
  0x7e   :  { %40 = vst.msk [vmem:[#allocation0] sm:$0x1] %vm39_vm6, %v38_v13  }
  0x80   :  { %v44_v14 = vpop.permute.xlu0 %43  }
  0x81   :  { %46 = vst.msk [vmem:[#allocation0] sm:$0x1] %vm45_vm7, %v44_v14  }
  0x88   :  { %v51_v15 = vld [vmem:[#allocation0] sm:$0x1] }
  0x89   :  { %54 = vst [vmem:[%s114_s1] sm:$0x1] %v51_v15 }

// kernel: upsample_forward.1
= control target key start
LH: loop header
LB: loop body
LE: loop exit
PB: predicated region body
PF: predicated region fallthrough
CT: control target
= control target key end

     0   :  { %s3655_s12 = smov 0   ;;  %s4151_s0 = inlined_call_operand.vmem [shape: bf16[2,5,5,5,4], index: 0, kind: input, shape index: {}]   ;;  %s4152_s1 = inlined_call_operand.vmem [shape: bf16[8,4,128], index: 1, kind: input, shape index: {}]   ;;  %s4153_s2 = inlined_call_operand.vmem [shape: f32[1,128], index: 2, kind: input, shape index: {}]   ;;  %s4154_s3 = inlined_call_operand.vmem [shape: f32[2,4,4,4,128], index: 3, kind: output, shape index: {}]  }
   0x1 LB: > { %s3213_s13 = sadd.s32 4294967295, %s3632_s12   ;;  %p3217_p0 = scmp.ge.s32.totalorder %s3632_s12, 1  ;;  %s3632_s12 = sphi %s3655_s12, %s13_s12  }
   0x2   : > { %p137_p1 = scmp.lt.s32.totalorder %s3632_s12, 3 }
   0x4   : > { %p138_p2 = pnand %p3217_p0, %p137_p1 }
   0x5   : > { %p161_p3 = scmp.lt.s32.totalorder (!%p138_p2), %s3213_s13, 1 }
   0x6   : > { %141 = sbr.rel (%p138_p2) target bundleno = 345 (0x159), region = 32 }
   0xb   : > { %v188_v0 = vld [vmem:[%s4152_s1] sm:$0x3]  ;;  %vm663_vm0 = vcmask 1041408   ;;  %v3237_v1 = vld [vmem:[%s4152_s1 + $0x2] sm:$0x3]  ;;  %v587_v2 = vlaneseq  ;;  %s4160_s13 = smov (!%p161_p3, %s3213_s13), 1 }
   0xc   : > { %3545 = vmatprep.subr.msk.bf16.mxu1 %vm663_vm0, %v188_v0  ;;  %v829_v3 = vsel %vm663_vm0, %v188_v0, 0  ;;  %3544 = vmatprep.subr.msk.bf16.mxu0 %vm663_vm0, %v3237_v1  ;;  %v665_v4 = vsel %vm663_vm0, %v3237_v1, 0  ;;  %v3634_v5 = vmov 1983009808   ;;  %vm349_vm1 = vsmask.f32 1280 }
   0xd   : > { %3475 = vmatpush3.bf16.msra.mxu1 %v829_v3  ;;  %v585_v6 = vunpack.c.l.s4 %v3634_v5  ;;  %v588_v7 = vshrl.u32 %v587_v2, 7  ;;  %3465 = vmatpush3.bf16.msra.mxu0 %v665_v4  ;;  %vm350_vm2 = vsmask.f32 3336  ;;  %v3262_v8 = vld [vmem:[%s4152_s1 + $0x4] sm:$0x3]  ;;  %s3552_s20 = smul.u32 100, %s4160_s13 }
   0xe   : > { %vm650_vm3 = vcmask 31744   ;;  %vm352_vm4 = vsmask.f32 5392  ;;  %3546 = vmatprep.subr.msk.bf16.mxu0 %vm663_vm0, %v3262_v8  ;;  %v3299_v10 = vld [vmem:[%s4152_s1 + $0x6] sm:$0x3]  ;;  %v3689_v12 = vsel %vm663_vm0, %v3262_v8, 0  ;;  %vm351_vm6 = vmor %vm349_vm1, %vm350_vm2 }
   0xf   : > { %v586_v9 = vunpack.c.0.s8 %v585_v6  ;;  %v3686_v11 = vld [vmem:[%s4152_s1 + $0x8] sm:$0x3]  ;;  %3547 = vmatprep.subr.msk.bf16.mxu1 %vm663_vm0, %v3299_v10  ;;  %v1554_v13 = vsel %vm663_vm0, %v3299_v10, 0  ;;  %v3357_v14 = vld [vmem:[%s4152_s1 + $0xa] sm:$0x3]  ;;  %s3704_s4 = scalar_lea.vmem %s4151_s0, %s3552_s20  ;;  %vm3731_vm7 = vmor %vm351_vm6, %vm352_vm4  ;;  %s3423_s9 = sshll.u32 %s4160_s13, 6 }
  0x10   : > { %v3699_v15 = vld [vmem:[%s4152_s1 + $0xc] sm:$0x3]  ;;  %v3710_v17 = vsel %vm663_vm0, %v3686_v11, 0  ;;  %v3713_v18 = vsel %vm663_vm0, %v3357_v14, 0  ;;  %vm354_vm5 = vsmask.f32 7448  ;;  %s4116_s13 = scalar_lea.vmem %s4154_s3, %s3423_s9 }
  0x11   : > { %v3706_v16 = vsub.s32 %v586_v9, %v588_v7  ;;  %v3717_v19 = vsel %vm663_vm0, %v3699_v15, 0  ;;  %v3594_v20 = vld.sshfl [vmem:[%s3704_s4] sm:$0xf pattern:$0x76325410]  ;;  %vm3742_vm8 = vmor %vm3731_vm7, %vm354_vm5 }
  0x12   : > { %v3595_v21 = vld.sshfl [vmem:[%s3704_s4 + $0x8] sm:$0xf pattern:$0x76325410] }
  0x13   : > { %v3596_v22 = vld.sshfl [vmem:[%s3704_s4 + $0x14] sm:$0xf pattern:$0x76325410]  ;;  %v764_v25 = vcombine.low %v3594_v20, %v3595_v21 }
  0x14   : > { %v3597_v23 = vld.sshfl [vmem:[%s3704_s4 + $0x1c] sm:$0xf pattern:$0x76325410] }
  0x15   : > { %v3221_v24 = vld.sshfl [vmem:[%s3704_s4] sm:$0x13 pattern:$0x76325410]  ;;  %3476 = vmatprep.mubr.msk.bf16.mxu1 %vm650_vm3, %v764_v25  ;;  %v781_v32 = vcombine.low %v3596_v22, %v3597_v23 }
  0x16   : > { %v3222_v26 = vld.sshfl [vmem:[%s3704_s4 + $0x4] sm:$0x13 pattern:$0x76325410]  ;;  %v228_v27 = vcombine.high %v3221_v24, %v3221_v24  ;;  %v357_v30 = vshrl.u32 %v3221_v24, 16  ;;  %v360_v31 = vshll.u32 %v3221_v24, 16 }
  0x17   : > { %v3223_v28 = vld.sshfl [vmem:[%s3704_s4 + $0x8] sm:$0x13 pattern:$0x76325410]  ;;  %v236_v29 = vcombine.high %v3222_v26, %v3222_v26  ;;  %v371_v36 = vshrl.u32 %v3222_v26, 16  ;;  %v374_v41 = vshll.u32 %v3222_v26, 16  ;;  %3477 = vmatmul.mubr.msk.bf16.vlgmr.msra.gmra.mxu1 %vm650_vm3, %v781_v32 }
  0x18   : > { %v3224_v33 = vld.sshfl [vmem:[%s3704_s4 + $0xc] sm:$0x13 pattern:$0x76325410]  ;;  %v244_v34 = vcombine.high %v3223_v28, %v3223_v28  ;;  %v366_v35 = vshll.u32 %v228_v27, 16  ;;  %v359_v39 = vrot.slane %v357_v30, 6  ;;  %3495 = vmatpush3.bf16.msra.mxu1 %v1554_v13 }
  0x19   : > { %v252_v37 = vcombine.high %v3224_v33, %v3224_v33  ;;  %v362_v40 = vrot.slane %v360_v31, 7  ;;  %v373_v43 = vrot.slane %v371_v36, 6  ;;  %v380_v44 = vshll.u32 %v236_v29, 16  ;;  %3549 = vmatprep.subr.msk.bf16.mxu1 %vm663_vm0, %v3357_v14 }
  0x1a   : > { %v368_v42 = vrot.slane %v366_v35, 7  ;;  %v385_v45 = vshrl.u32 %v3223_v28, 16  ;;  %v376_v47 = vrot.slane %v374_v41, 7  ;;  %v388_v48 = vshll.u32 %v3223_v28, 16 }
  0x1b   : > { %v363_v46 = vor.u32 %v362_v40, %v359_v39  ;;  %v394_v49 = vshll.u32 %v244_v34, 16  ;;  %v3737_v50 = vld.sshfl [vmem:[%s3704_s4 + $0x28] sm:$0xf pattern:$0x76325410]  ;;  %v382_v52 = vrot.slane %v380_v44, 7 }
  0x1c   : > { %v387_v53 = vrot.slane %v385_v45, 6  ;;  %v399_v54 = vshrl.u32 %v3224_v33, 16  ;;  %v402_v55 = vshll.u32 %v3224_v33, 16  ;;  %v377_v58 = vor.u32 %v376_v47, %v373_v43 }
  0x1d   : > { %v3747_v56 = vld.sshfl [vmem:[%s3704_s4 + $0x30] sm:$0xf pattern:$0x76325410]  ;;  %v364_v57 = vrot.slane %v363_v46, 2  ;;  %v390_v59 = vrot.slane %v388_v48, 7 }
  0x1e   : > { %v396_v60 = vrot.slane %v394_v49, 7  ;;  %v401_v61 = vrot.slane %v399_v54, 6  ;;  %v404_v62 = vrot.slane %v402_v55, 7  ;;  %v408_v63 = vshll.u32 %v252_v37, 16 }
  0x1f   : > { %v369_v0 = vsel %vm3742_vm8, %v364_v57, %v368_v42  ;;  %v378_v1 = vrot.slane %v377_v58, 2  ;;  %v391_v2 = vor.u32 %v390_v59, %v387_v53  ;;  %v3225_v3 = vld.sshfl [vmem:[%s3704_s4 + $0x14] sm:$0x13 pattern:$0x76325410] }
  0x20   : > { %v405_v4 = vor.u32 %v404_v62, %v401_v61  ;;  %v410_v5 = vrot.slane %v408_v63, 7  ;;  %v3226_v6 = vld.sshfl [vmem:[%s3704_s4 + $0x18] sm:$0x13 pattern:$0x76325410]  ;;  %v260_v7 = vcombine.high %v3225_v3, %v3225_v3  ;;  %v413_v8 = vshrl.u32 %v3225_v3, 16 }
  0x21   : > { %v3756_v9 = vsel %vm3742_vm8, %v378_v1, %v382_v52  ;;  %v392_v10 = vrot.slane %v391_v2, 2  ;;  %v3227_v13 = vld.sshfl [vmem:[%s3704_s4 + $0x1c] sm:$0x13 pattern:$0x76325410]  ;;  %v268_v14 = vcombine.high %v3226_v6, %v3226_v6  ;;  %v416_v20 = vshll.u32 %v3225_v3, 16 }
  0x22   : > { %v406_v21 = vrot.slane %v405_v4, 2  ;;  %v582_v22 = vcombine.low %v369_v0, %v3756_v9  ;;  %v3228_v23 = vld.sshfl [vmem:[%s3704_s4 + $0x20] sm:$0x13 pattern:$0x76325410]  ;;  %v276_v24 = vcombine.high %v3227_v13, %v3227_v13  ;;  %v415_v25 = vrot.slane %v413_v8, 6 }
  0x23   : > { %v3763_v26 = vsel %vm3742_vm8, %v392_v10, %v396_v60  ;;  %v284_v27 = vcombine.high %v3228_v23, %v3228_v23  ;;  %v418_v28 = vrot.slane %v416_v20, 7  ;;  %v422_v29 = vshll.u32 %v260_v7, 16  ;;  %v3600_v38 = vld.sshfl [vmem:[%s3704_s4 + $0x3c] sm:$0xf pattern:$0x76325410] }
  0x24   : > { %v3767_v30 = vsel %vm3742_vm8, %v406_v21, %v410_v5  ;;  %v590_v31 = vrot.slane %v582_v22, %v3706_v16  ;;  %v427_v32 = vshrl.u32 %v3226_v6, 16  ;;  %v430_v33 = vshll.u32 %v3226_v6, 16  ;;  %v3601_v39 = vld.sshfl [vmem:[%s3704_s4 + $0x44] sm:$0xf pattern:$0x76325410] }
  0x25   : > { %v583_v34 = vcombine.low %v3763_v26, %v3767_v30  ;;  %v419_v35 = vor.u32 %v418_v28, %v415_v25  ;;  %v424_v36 = vrot.slane %v422_v29, 7  ;;  %v436_v37 = vshll.u32 %v268_v14, 16  ;;  %v3229_v59 = vld.sshfl [vmem:[%s3704_s4 + $0x28] sm:$0x13 pattern:$0x76325410] }
  0x26   : > { %v429_v40 = vrot.slane %v427_v32, 6  ;;  %v432_v41 = vrot.slane %v430_v33, 7  ;;  %v441_v42 = vshrl.u32 %v3227_v13, 16  ;;  %v444_v43 = vshll.u32 %v3227_v13, 16 }
  0x27   : > { %v597_v44 = vrot.slane %v583_v34, %v3706_v16  ;;  %v420_v45 = vrot.slane %v419_v35, 2  ;;  %v438_v46 = vrot.slane %v436_v37, 7  ;;  %v450_v47 = vshll.u32 %v276_v24, 16 }
  0x28   : > { %v433_v48 = vor.u32 %v432_v41, %v429_v40  ;;  %v443_v49 = vrot.slane %v441_v42, 6  ;;  %v446_v52 = vrot.slane %v444_v43, 7  ;;  %v455_v53 = vshrl.u32 %v3228_v23, 16 }
  0x29   : > { %v598_v54 = vcombine.low %v590_v31, %v597_v44  ;;  %v425_v55 = vsel %vm3742_vm8, %v420_v45, %v424_v36  ;;  %v452_v57 = vrot.slane %v450_v47, 7  ;;  %v458_v58 = vshll.u32 %v3228_v23, 16  ;;  %v3230_v2 = vld.sshfl [vmem:[%s3704_s4 + $0x2c] sm:$0x13 pattern:$0x76325410] }
  0x2a   : > { %v434_v60 = vrot.slane %v433_v48, 2  ;;  %v447_v61 = vor.u32 %v446_v52, %v443_v49  ;;  %v457_v62 = vrot.slane %v455_v53, 6  ;;  %v464_v63 = vshll.u32 %v284_v27, 16 }
  0x2b   : > { %3466 = vmatprep.mubr.msk.bf16.mxu0 %vm650_vm3, %v598_v54  ;;  %v460_v0 = vrot.slane %v458_v58, 7  ;;  %v798_v1 = vcombine.low %v3737_v50, %v3747_v56  ;;  %v3231_v6 = vld.sshfl [vmem:[%s3704_s4 + $0x30] sm:$0x13 pattern:$0x76325410]  ;;  %v292_v7 = vcombine.high %v3229_v59, %v3229_v59  ;;  %v815_v13 = vcombine.low %v3600_v38, %v3601_v39 }
  0x2c   : > { %v3784_v3 = vsel %vm3742_vm8, %v434_v60, %v438_v46  ;;  %v448_v4 = vrot.slane %v447_v61, 2  ;;  %v466_v5 = vrot.slane %v464_v63, 7  ;;  %v3232_v14 = vld.sshfl [vmem:[%s3704_s4 + $0x34] sm:$0x13 pattern:$0x76325410]  ;;  %v300_v20 = vcombine.high %v3230_v2, %v3230_v2 }
  0x2d   : > { %v461_v8 = vor.u32 %v460_v0, %v457_v62  ;;  %v599_v10 = vcombine.low %v425_v55, %v3784_v3  ;;  %3480 = vmatprep.mubr.msk.bf16.mxu1 %vm650_vm3, %v798_v1  ;;  %v308_v56 = vcombine.high %v3231_v6, %v3231_v6  ;;  %v316_v21 = vcombine.high %v3232_v14, %v3232_v14  ;;  %v3233_v49 = vld.sshfl [vmem:[%s3704_s4 + $0x3c] sm:$0x13 pattern:$0x76325410] }
  0x2e   : > { %v3792_v50 = vsel %vm3742_vm8, %v448_v4, %v452_v57  ;;  %v469_v22 = vshrl.u32 %v3229_v59, 16  ;;  %3481 = vmatmul.mubr.msk.bf16.gmra.mxu1 %vm650_vm3, %v815_v13  ;;  %v472_v25 = vshll.u32 %v3229_v59, 16  ;;  %v478_v27 = vshll.u32 %v292_v7, 16 }
  0x2f   : > { %v462_v23 = vrot.slane %v461_v8, 2  ;;  %v607_v24 = vrot.slane %v599_v10, %v3706_v16  ;;  %v483_v29 = vshrl.u32 %v3230_v2, 16  ;;  %v486_v31 = vshll.u32 %v3230_v2, 16 }
  0x30   : > { %v471_v28 = vrot.slane %v469_v22, 6  ;;  %v492_v32 = vshll.u32 %v300_v20, 16  ;;  %v474_v34 = vrot.slane %v472_v25, 7  ;;  %v480_v35 = vrot.slane %v478_v27, 7 }
  0x31   : > { %v3798_v33 = vsel %vm3742_vm8, %v462_v23, %v466_v5  ;;  %v497_v36 = vshrl.u32 %v3231_v6, 16  ;;  %v485_v38 = vrot.slane %v483_v29, 6  ;;  %v488_v39 = vrot.slane %v486_v31, 7 }
  0x32   : > { %v600_v37 = vcombine.low %v3792_v50, %v3798_v33  ;;  %v494_v40 = vrot.slane %v492_v32, 7  ;;  %v475_v41 = vor.u32 %v474_v34, %v471_v28  ;;  %v500_v43 = vshll.u32 %v3231_v6, 16  ;;  %v3234_v57 = vld.sshfl [vmem:[%s3704_s4 + $0x40] sm:$0x13 pattern:$0x76325410] }
  0x33   : > { %v499_v42 = vrot.slane %v497_v36, 6  ;;  %v506_v44 = vshll.u32 %v308_v56, 16  ;;  %v489_v46 = vor.u32 %v488_v39, %v485_v38  ;;  %v511_v47 = vshrl.u32 %v3232_v14, 16 }
  0x34   : > { %v614_v45 = vrot.slane %v600_v37, %v3706_v16  ;;  %v514_v48 = vshll.u32 %v3232_v14, 16  ;;  %v476_v52 = vrot.slane %v475_v41, 2  ;;  %v502_v53 = vrot.slane %v500_v43, 7 }
  0x35   : > { %v508_v54 = vrot.slane %v506_v44, 7  ;;  %v520_v55 = vshll.u32 %v316_v21, 16  ;;  %v490_v59 = vrot.slane %v489_v46, 2  ;;  %v513_v60 = vrot.slane %v511_v47, 6 }
  0x36   : > { %v3805_v58 = vcombine.low %v607_v24, %v614_v45  ;;  %v516_v61 = vrot.slane %v514_v48, 7  ;;  %v481_v62 = vsel %vm3742_vm8, %v476_v52, %v480_v35  ;;  %v503_v63 = vor.u32 %v502_v53, %v499_v42  ;;  %v3235_v1 = vld.sshfl [vmem:[%s3704_s4 + $0x44] sm:$0x13 pattern:$0x76325410] }
  0x37   : > { %v522_v0 = vrot.slane %v520_v55, 7  ;;  %v324_v2 = vcombine.high %v3233_v49, %v3233_v49  ;;  %v3814_v4 = vsel %vm3742_vm8, %v490_v59, %v494_v40  ;;  %v3236_v6 = vld.sshfl [vmem:[%s3704_s4 + $0x48] sm:$0x13 pattern:$0x76325410]  ;;  %v332_v7 = vcombine.high %v3234_v57, %v3234_v57 }
  0x38   : > { %3467 = vmatmul.mubr.msk.bf16.vlgmr.msra.gmra.mxu0 %vm650_vm3, %v3805_v58  ;;  %v517_v5 = vor.u32 %v516_v61, %v513_v60  ;;  %v340_v8 = vcombine.high %v3235_v1, %v3235_v1  ;;  %v504_v10 = vrot.slane %v503_v63, 2  ;;  %v616_v13 = vcombine.low %v481_v62, %v3814_v4  ;;  %v3286_v45 = vld.sshfl [vmem:[%s3704_s4 + $0x10] sm:$0x13 pattern:$0x76325410] }
  0x39   : > { %3485 = vmatpush3.bf16.msra.mxu0 %v3689_v12  ;;  %v348_v14 = vcombine.high %v3236_v6, %v3236_v6  ;;  %v525_v20 = vshrl.u32 %v3233_v49, 16  ;;  %v528_v21 = vshll.u32 %v3233_v49, 16  ;;  %v534_v22 = vshll.u32 %v324_v2, 16 }
  0x3a   : > { %v518_v56 = vrot.slane %v517_v5, 2  ;;  %v539_v23 = vshrl.u32 %v3234_v57, 16  ;;  %3548 = vmatprep.subr.msk.bf16.mxu0 %vm663_vm0, %v3686_v11  ;;  %v3823_v24 = vsel %vm3742_vm8, %v504_v10, %v508_v54  ;;  %v624_v25 = vrot.slane %v616_v13, %v3706_v16  ;;  %v3840_v63 = vld.sshfl [vmem:[%s3704_s4 + $0x4] sm:$0xf pattern:$0x76325410] }
  0x3b   : > { %v527_v27 = vrot.slane %v525_v20, 6  ;;  %v542_v12 = vshll.u32 %v3234_v57, 16  ;;  %v530_v29 = vrot.slane %v528_v21, 7  ;;  %v536_v31 = vrot.slane %v534_v22, 7 }
  0x3c   : > { %v3828_v28 = vsel %vm3742_vm8, %v518_v56, %v522_v0  ;;  %v541_v32 = vrot.slane %v539_v23, 6  ;;  %v548_v35 = vshll.u32 %v332_v7, 16  ;;  %v553_v36 = vshrl.u32 %v3235_v1, 16 }
  0x3d   : > { %v617_v34 = vcombine.low %v3823_v24, %v3828_v28  ;;  %v544_v11 = vrot.slane %v542_v12, 7  ;;  %v531_v37 = vor.u32 %v530_v29, %v527_v27  ;;  %v556_v38 = vshll.u32 %v3235_v1, 16  ;;  %v3290_v57 = vld.sshfl [vmem:[%s3704_s4 + $0x24] sm:$0x13 pattern:$0x76325410] }
  0x3e   : > { %v562_v39 = vshll.u32 %v340_v8, 16  ;;  %v567_v40 = vshrl.u32 %v3236_v6, 16  ;;  %v550_v43 = vrot.slane %v548_v35, 7  ;;  %v555_v44 = vrot.slane %v553_v36, 6 }
  0x3f   : > { %v631_v41 = vrot.slane %v617_v34, %v3706_v16  ;;  %v545_v42 = vor.u32 %v544_v11, %v541_v32  ;;  %v532_v46 = vrot.slane %v531_v37, 2  ;;  %v558_v47 = vrot.slane %v556_v38, 7  ;;  %v3603_v13 = vld.sshfl [vmem:[%s3704_s4 + $0xc] sm:$0xf pattern:$0x76325410] }
  0x40   : > { %v564_v48 = vrot.slane %v562_v39, 7  ;;  %v569_v49 = vrot.slane %v567_v40, 6  ;;  %v570_v54 = vshll.u32 %v3236_v6, 16  ;;  %v576_v55 = vshll.u32 %v348_v14, 16 }
  0x41   : > { %v3834_v52 = vcombine.low %v624_v25, %v631_v41  ;;  %v546_v53 = vrot.slane %v545_v42, 2  ;;  %v537_v59 = vsel %vm3742_vm8, %v532_v46, %v536_v31  ;;  %v559_v60 = vor.u32 %v558_v47, %v555_v44  ;;  %v3853_v22 = vld.sshfl [vmem:[%s3704_s4 + $0x18] sm:$0xf pattern:$0x76325410] }
  0x42   : > { %v1150_v61 = vcombine.high %v3286_v45, %v3286_v45  ;;  %v1290_v62 = vshrl.u32 %v3286_v45, 16  ;;  %v572_v1 = vrot.slane %v570_v54, 7  ;;  %v578_v2 = vrot.slane %v576_v55, 7 }
  0x43   : > { %3470 = vmatprep.mubr.msk.bf16.mxu0 %vm650_vm3, %v3834_v52  ;;  %v3846_v0 = vsel %vm3742_vm8, %v546_v53, %v550_v43  ;;  %v1293_v5 = vshll.u32 %v3286_v45, 16  ;;  %v560_v6 = vrot.slane %v559_v60, 2  ;;  %v1473_v56 = vcombine.low %v3756_v9, %v3763_v26  ;;  %v3862_v11 = vld.sshfl [vmem:[%s3704_s4 + $0x20] sm:$0xf pattern:$0x76325410] }
  0x44   : > { %v633_v7 = vcombine.low %v537_v59, %v3846_v0  ;;  %v1292_v8 = vrot.slane %v1290_v62, 6  ;;  %v1299_v10 = vshll.u32 %v1150_v61, 16  ;;  %v573_v14 = vor.u32 %v572_v1, %v569_v49  ;;  %v3294_v35 = vld.sshfl [vmem:[%s3704_s4 + $0x38] sm:$0x13 pattern:$0x76325410] }
  0x45   : > { %v1295_v20 = vrot.slane %v1293_v5, 7  ;;  %v1182_v21 = vcombine.high %v3290_v57, %v3290_v57  ;;  %v3857_v23 = vsel %vm3742_vm8, %v560_v6, %v564_v48  ;;  %v1346_v12 = vshrl.u32 %v3290_v57, 16  ;;  %v3298_v48 = vld.sshfl [vmem:[%s3704_s4 + $0x4c] sm:$0x13 pattern:$0x76325410] }
  0x46   : > { %v641_v25 = vrot.slane %v633_v7, %v3706_v16  ;;  %v1301_v27 = vrot.slane %v1299_v10, 7  ;;  %v574_v29 = vrot.slane %v573_v14, 2  ;;  %v1481_v32 = vrot.slane %v1473_v56, %v3706_v16  ;;  %v3607_v59 = vld.sshfl [vmem:[%s3704_s4 + $0x34] sm:$0xf pattern:$0x76325410] }
  0x47   : > { %v1296_v31 = vor.u32 %v1295_v20, %v1292_v8  ;;  %v1349_v34 = vshll.u32 %v3290_v57, 16  ;;  %v1348_v9 = vrot.slane %v1346_v12, 6  ;;  %v1355_v26 = vshll.u32 %v1182_v21, 16 }
  0x48   : > { %v1490_v36 = vcombine.low %v3784_v3, %v3792_v50  ;;  %v3869_v37 = vsel %vm3742_vm8, %v574_v29, %v578_v2  ;;  %v947_v3 = vcombine.low %v3840_v63, %v3603_v13  ;;  %v1214_v46 = vcombine.high %v3294_v35, %v3294_v35  ;;  %v3606_v57 = vld.sshfl [vmem:[%s3704_s4 + $0x2c] sm:$0xf pattern:$0x76325410] }
  0x49   : > { %v1297_v38 = vrot.slane %v1296_v31, 2  ;;  %v1351_v39 = vrot.slane %v1349_v34, 7  ;;  %v634_v40 = vcombine.low %v3857_v23, %v3869_v37  ;;  %v1357_v41 = vrot.slane %v1355_v26, 7 }
  0x4a   : > { %v1498_v42 = vrot.slane %v1490_v36, %v3706_v16  ;;  %v1402_v47 = vshrl.u32 %v3294_v35, 16  ;;  %v964_v53 = vcombine.low %v3853_v22, %v3862_v11  ;;  %v1405_v54 = vshll.u32 %v3294_v35, 16  ;;  %v3890_v63 = vld.sshfl [vmem:[%s3704_s4 + $0x40] sm:$0xf pattern:$0x76325410] }
  0x4b   : > { %v1302_v43 = vsel %vm3742_vm8, %v1297_v38, %v1301_v27  ;;  %v1352_v44 = vor.u32 %v1351_v39, %v1348_v9  ;;  %v648_v50 = vrot.slane %v634_v40, %v3706_v16  ;;  %v1507_v55 = vcombine.low %v3814_v4, %v3823_v24  ;;  %v3893_v1 = vld.sshfl [vmem:[%s3704_s4 + $0x48] sm:$0xf pattern:$0x76325410] }
  0x4c   : > { %v1474_v45 = vcombine.low %v3767_v30, %v1302_v43  ;;  %v1404_v30 = vrot.slane %v1402_v47, 6  ;;  %v1411_v62 = vshll.u32 %v1214_v46, 16  ;;  %v1407_v5 = vrot.slane %v1405_v54, 7 }
  0x4d   : > { %v1353_v49 = vrot.slane %v1352_v44, 2  ;;  %v3886_v60 = vcombine.low %v641_v25, %v648_v50  ;;  %v3900_v4 = vrot.slane %v1507_v55, %v3706_v16  ;;  %v1246_v24 = vcombine.high %v3298_v48, %v3298_v48  ;;  %v3903_v6 = vld.sshfl [vmem:[%s3704_s4 + $0x14] sm:$0xf pattern:$0x76325410] }
  0x4e   : > { %v1488_v61 = vrot.slane %v1474_v45, %v3706_v16  ;;  %v3906_v7 = vld.sshfl [vmem:[%s3704_s4 + $0x1c] sm:$0xf pattern:$0x76325410]  ;;  %v1413_v13 = vrot.slane %v1411_v62, 7  ;;  %v1458_v14 = vshrl.u32 %v3298_v48, 16  ;;  %v1408_v20 = vor.u32 %v1407_v5, %v1404_v30 }
  0x4f   : > { %v3897_v2 = vsel %vm3742_vm8, %v1353_v49, %v1357_v41  ;;  %3471 = vmatmul.mubr.msk.bf16.gmra.mxu0 %vm650_vm3, %v3886_v60  ;;  %v1461_v56 = vshll.u32 %v3298_v48, 16  ;;  %v1467_v21 = vshll.u32 %v1246_v24, 16  ;;  %v1524_v22 = vcombine.low %v3846_v0, %v3857_v23  ;;  %v3916_v25 = vld.sshfl [vmem:[%s3704_s4 + $0x28] sm:$0xf pattern:$0x76325410] }
  0x50   : > { %v1489_v8 = vcombine.low %v1481_v32, %v1488_v61  ;;  %v1491_v10 = vcombine.low %v3798_v33, %v3897_v2  ;;  %3486 = vmatprep.mubr.msk.bf16.mxu0 %vm650_vm3, %v947_v3  ;;  %v3919_v27 = vld.sshfl [vmem:[%s3704_s4 + $0x30] sm:$0xf pattern:$0x76325410]  ;;  %v1460_v12 = vrot.slane %v1458_v14, 6  ;;  %v1409_v29 = vrot.slane %v1408_v20, 2 }
  0x51   : > { %v1463_v31 = vrot.slane %v1461_v56, 7  ;;  %v1469_v32 = vrot.slane %v1467_v21, 7  ;;  %v1532_v34 = vrot.slane %v1524_v22, %v3706_v16  ;;  %v981_v35 = vcombine.low %v3606_v57, %v3607_v59  ;;  %v3415_v0 = vld [vmem:[%s4152_s1 + $0xe] sm:$0x3] }
  0x52   : > { %3496 = vmatprep.mubr.msk.bf16.mxu1 %vm650_vm3, %v1489_v8  ;;  %v1505_v33 = vrot.slane %v1491_v10, %v3706_v16  ;;  %v3929_v23 = vsel %vm3742_vm8, %v1409_v29, %v1413_v13  ;;  %v3353_v26 = vld.sshfl [vmem:[%s3704_s4 + $0x50] sm:$0x13 pattern:$0x76325410]  ;;  %v998_v38 = vcombine.low %v3890_v63, %v3893_v1  ;;  %v1680_v41 = vcombine.low %v3903_v6, %v3906_v7 }
  0x53   : > { %v1464_v9 = vor.u32 %v1463_v31, %v1460_v12  ;;  %v1508_v36 = vcombine.low %v3828_v28, %v3929_v23  ;;  %v3354_v39 = vld.sshfl [vmem:[%s3704_s4 + $0x54] sm:$0x13 pattern:$0x76325410]  ;;  %v1955_v44 = vcombine.high %v3353_v26, %v3353_v26  ;;  %v1697_v28 = vcombine.low %v3916_v25, %v3919_v27 }
  0x54   : > { %v1506_v11 = vcombine.low %v1498_v42, %v1505_v33  ;;  %v3942_v42 = vsel %vm663_vm0, %v3415_v0, 0  ;;  %v3355_v43 = vld.sshfl [vmem:[%s3704_s4 + $0x58] sm:$0x13 pattern:$0x76325410]  ;;  %v1963_v50 = vcombine.high %v3354_v39, %v3354_v39  ;;  %v2149_v45 = vshrl.u32 %v3353_v26, 16 }
  0x55   : > { %v1465_v40 = vrot.slane %v1464_v9, 2  ;;  %v1522_v3 = vrot.slane %v1508_v36, %v3706_v16  ;;  %v1971_v47 = vcombine.high %v3355_v43, %v3355_v43  ;;  %v2152_v49 = vshll.u32 %v3353_v26, 16  ;;  %v3963_v57 = vld.sshfl [vmem:[%s3704_s4 + $0x3c] sm:$0xf pattern:$0x76325410] }
  0x56   : > { %3497 = vmatmul.mubr.msk.bf16.vlgmr.msra.gmra.mxu1 %vm650_vm3, %v1506_v11  ;;  %v2151_v55 = vrot.slane %v2149_v45, 6  ;;  %v2163_v61 = vshrl.u32 %v3354_v39, 16  ;;  %v2166_v30 = vshll.u32 %v3354_v39, 16  ;;  %v2172_v62 = vshll.u32 %v1963_v50, 16 }
  0x57   : > { %3515 = vmatpush3.bf16.msra.mxu1 %v3713_v18  ;;  %3487 = vmatmul.mubr.msk.bf16.vlgmr.msra.gmra.mxu0 %vm650_vm3, %v964_v53  ;;  %v3356_v18 = vld.sshfl [vmem:[%s3704_s4 + $0x5c] sm:$0x13 pattern:$0x76325410]  ;;  %v3954_v46 = vsel %vm3742_vm8, %v1465_v40, %v1469_v32  ;;  %v1523_v53 = vcombine.low %v3900_v4, %v1522_v3  ;;  %v2154_v59 = vrot.slane %v2152_v49, 7  ;;  %v2177_v5 = vshrl.u32 %v3355_v43, 16 }
  0x58   : > { %3551 = vmatprep.subr.msk.bf16.mxu1 %vm663_vm0, %v3415_v0  ;;  %3505 = vmatpush3.bf16.msra.mxu0 %v3710_v17  ;;  %v1979_v48 = vcombine.high %v3356_v18, %v3356_v18  ;;  %v1525_v54 = vcombine.low %v3869_v37, %v3954_v46  ;;  %v2158_v17 = vshll.u32 %v1955_v44, 16  ;;  %v2180_v37 = vshll.u32 %v3355_v43, 16  ;;  %v3968_v4 = vld.sshfl [vmem:[%s3704_s4 + $0x44] sm:$0xf pattern:$0x76325410] }
  0x59   : > { %3490 = vmatprep.mubr.msk.bf16.mxu0 %vm650_vm3, %v981_v35  ;;  %3550 = vmatprep.subr.msk.bf16.mxu0 %vm663_vm0, %v3699_v15  ;;  %v2155_v15 = vor.u32 %v2154_v59, %v2151_v55  ;;  %v2165_v24 = vrot.slane %v2163_v61, 6  ;;  %v2168_v6 = vrot.slane %v2166_v30, 7  ;;  %v2174_v7 = vrot.slane %v2172_v62, 7 }
  0x5a   : > { %3500 = vmatprep.mubr.msk.bf16.mxu1 %vm650_vm3, %v1523_v53  ;;  %v1539_v63 = vrot.slane %v1525_v54, %v3706_v16  ;;  %v2160_v1 = vrot.slane %v2158_v17, 7  ;;  %v3971_v8 = vld.sshfl [vmem:[%s3704_s4 + $0x50] sm:$0xf pattern:$0x76325410]  ;;  %v2179_v13 = vrot.slane %v2177_v5, 6  ;;  %v1714_v44 = vcombine.low %v3963_v57, %v3968_v4 }
  0x5b   : > { %v2182_v14 = vrot.slane %v2180_v37, 7  ;;  %v2186_v20 = vshll.u32 %v1971_v47, 16  ;;  %v3974_v56 = vld.sshfl [vmem:[%s3704_s4 + $0x58] sm:$0xf pattern:$0x76325410]  ;;  %v2169_v22 = vor.u32 %v2168_v6, %v2165_v24 }
  0x5c   : > { %v1540_v10 = vcombine.low %v1532_v34, %v1539_v63  ;;  %v2156_v21 = vrot.slane %v2155_v15, 2  ;;  %v2191_v33 = vshrl.u32 %v3356_v18, 16  ;;  %v2194_v12 = vshll.u32 %v3356_v18, 16 }
  0x5d   : > { %v2183_v29 = vor.u32 %v2182_v14, %v2179_v13  ;;  %v2188_v31 = vrot.slane %v2186_v20, 7  ;;  %v2200_v32 = vshll.u32 %v1979_v48, 16  ;;  %v2170_v11 = vrot.slane %v2169_v22, 2 }
  0x5e   : > { %3501 = vmatmul.mubr.msk.bf16.gmra.mxu1 %vm650_vm3, %v1540_v10  ;;  %v2161_v34 = vsel %vm3742_vm8, %v2156_v21, %v2160_v1  ;;  %v2193_v35 = vrot.slane %v2191_v33, 6  ;;  %v2196_v0 = vrot.slane %v2194_v12, 7  ;;  %v3399_v36 = vld.sshfl [vmem:[%s3704_s4 + $0x18] sm:$0x13 pattern:$0x76325410]  ;;  %v1731_v45 = vcombine.low %v3971_v8, %v3974_v56 }
  0x5f   : > { %3491 = vmatmul.mubr.msk.bf16.gmra.mxu0 %vm650_vm3, %v998_v38  ;;  %3516 = vmatprep.mubr.msk.bf16.mxu1 %vm650_vm3, %v3805_v58  ;;  %v2184_v9 = vrot.slane %v2183_v29, 2  ;;  %v2202_v26 = vrot.slane %v2200_v32, 7  ;;  %v3986_v38 = vsel %vm3742_vm8, %v2170_v11, %v2174_v7  ;;  %v3400_v40 = vld.sshfl [vmem:[%s3704_s4 + $0x1c] sm:$0x13 pattern:$0x76325410]  ;;  %v2592_v43 = vcombine.high %v3399_v36, %v3399_v36 }
  0x60   : > { %3506 = vmatprep.mubr.msk.bf16.mxu0 %vm650_vm3, %v1680_v41  ;;  %v2197_v39 = vor.u32 %v2196_v0, %v2193_v35  ;;  %v2257_v41 = vcombine.low %v2161_v34, %v3986_v38  ;;  %v3401_v3 = vld.sshfl [vmem:[%s3704_s4 + $0x20] sm:$0x13 pattern:$0x76325410]  ;;  %v2600_v18 = vcombine.high %v3400_v40, %v3400_v40  ;;  %v2714_v48 = vshrl.u32 %v3399_v36, 16 }
  0x61   : > { %v3991_v58 = vsel %vm3742_vm8, %v2184_v9, %v2188_v31  ;;  %v2608_v47 = vcombine.high %v3401_v3, %v3401_v3  ;;  %v2717_v53 = vshll.u32 %v3399_v36, 16  ;;  %v2723_v54 = vshll.u32 %v2592_v43, 16  ;;  %v3403_v30 = vld.sshfl [vmem:[%s3704_s4 + $0x2c] sm:$0x13 pattern:$0x76325410] }
  0x62   : > { %v2198_v50 = vrot.slane %v2197_v39, 2  ;;  %v2265_v49 = vrot.slane %v2257_v41, %v3706_v16  ;;  %v2728_v55 = vshrl.u32 %v3400_v40, 16  ;;  %v2716_v59 = vrot.slane %v2714_v48, 6 }
  0x63   : > { %v2731_v57 = vshll.u32 %v3400_v40, 16  ;;  %v2737_v61 = vshll.u32 %v2600_v18, 16  ;;  %v2719_v63 = vrot.slane %v2717_v53, 7  ;;  %v2725_v1 = vrot.slane %v2723_v54, 7 }
  0x64   : > { %v4002_v17 = vsel %vm3742_vm8, %v2198_v50, %v2202_v26  ;;  %v2730_v5 = vrot.slane %v2728_v55, 6  ;;  %v3404_v37 = vld.sshfl [vmem:[%s3704_s4 + $0x30] sm:$0x13 pattern:$0x76325410]  ;;  %v2745_v24 = vshll.u32 %v3401_v3, 16  ;;  %v2624_v7 = vcombine.high %v3403_v30, %v3403_v30 }
  0x65   : > { %v2258_v62 = vcombine.low %v3991_v58, %v4002_v17  ;;  %v2733_v4 = vrot.slane %v2731_v57, 7  ;;  %v2739_v15 = vrot.slane %v2737_v61, 7  ;;  %v2720_v27 = vor.u32 %v2719_v63, %v2716_v59  ;;  %v3405_v6 = vld.sshfl [vmem:[%s3704_s4 + $0x34] sm:$0x13 pattern:$0x76325410] }
  0x66   : > { %3517 = vmatmul.mubr.msk.bf16.vlgmr.msra.gmra.mxu1 %vm650_vm3, %v3834_v52  ;;  %v2742_v52 = vshrl.u32 %v3401_v3, 16  ;;  %v2632_v13 = vcombine.high %v3404_v37, %v3404_v37  ;;  %v2640_v56 = vcombine.high %v3405_v6, %v3405_v6  ;;  %v2770_v33 = vshrl.u32 %v3403_v30, 16  ;;  %v3618_v40 = vld.sshfl [vmem:[%s3704_s4 + $0x18] sm:$0xf pattern:$0x76325410] }
  0x67   : > { %3507 = vmatmul.mubr.msk.bf16.vlgmr.msra.gmra.mxu0 %vm650_vm3, %v1697_v28  ;;  %3535 = vmatpush3.bf16.msra.mxu1 %v3942_v42  ;;  %v2272_v25 = vrot.slane %v2258_v62, %v3706_v16  ;;  %v2751_v28 = vshll.u32 %v2608_v47, 16  ;;  %v2734_v8 = vor.u32 %v2733_v4, %v2730_v5  ;;  %v2721_v14 = vrot.slane %v2720_v27, 2  ;;  %v3619_v18 = vld.sshfl [vmem:[%s3704_s4 + $0x20] sm:$0xf pattern:$0x76325410] }
  0x68   : > { %3525 = vmatpush3.bf16.msra.mxu0 %v3717_v19  ;;  %3520 = vmatprep.mubr.msk.bf16.mxu1 %vm650_vm3, %v3886_v60  ;;  %v2744_v10 = vrot.slane %v2742_v52, 6  ;;  %v2747_v19 = vrot.slane %v2745_v24, 7  ;;  %v2773_v60 = vshll.u32 %v3403_v30, 16  ;;  %v2779_v29 = vshll.u32 %v2624_v7, 16 }
  0x69   : > { %3510 = vmatprep.mubr.msk.bf16.mxu0 %vm650_vm3, %v1714_v44  ;;  %v2273_v42 = vcombine.low %v2265_v49, %v2272_v25  ;;  %v2753_v20 = vrot.slane %v2751_v28, 7  ;;  %v2735_v21 = vrot.slane %v2734_v8, 2  ;;  %v2726_v12 = vsel %vm3742_vm8, %v2721_v14, %v2725_v1  ;;  %v3620_v50 = vld.sshfl [vmem:[%s3704_s4 + $0x2c] sm:$0xf pattern:$0x76325410] }
  0x6a   : > { %v2748_v22 = vor.u32 %v2747_v19, %v2744_v10  ;;  %v2784_v31 = vshrl.u32 %v3404_v37, 16  ;;  %v2787_v32 = vshll.u32 %v3404_v37, 16  ;;  %v2772_v35 = vrot.slane %v2770_v33, 6 }
  0x6b   : > { %v2740_v34 = vsel %vm3742_vm8, %v2735_v21, %v2739_v15  ;;  %v2775_v0 = vrot.slane %v2773_v60, 7  ;;  %v2781_v26 = vrot.slane %v2779_v29, 7  ;;  %v2793_v44 = vshll.u32 %v2632_v13, 16 }
  0x6c   : > { %v2749_v11 = vrot.slane %v2748_v22, 2  ;;  %v2939_v9 = vcombine.low %v2726_v12, %v2740_v34  ;;  %v2786_v36 = vrot.slane %v2784_v31, 6  ;;  %v2789_v39 = vrot.slane %v2787_v32, 7 }
  0x6d   : > { %v2776_v41 = vor.u32 %v2775_v0, %v2772_v35  ;;  %v2798_v3 = vshrl.u32 %v3405_v6, 16  ;;  %v2801_v49 = vshll.u32 %v3405_v6, 16  ;;  %v3621_v53 = vld.sshfl [vmem:[%s3704_s4 + $0x34] sm:$0xf pattern:$0x76325410]  ;;  %v2413_v24 = vcombine.low %v3618_v40, %v3619_v18 }
  0x6e   : > { %3521 = vmatmul.mubr.msk.bf16.gmra.mxu1 %vm650_vm3, %v2273_v42  ;;  %v2754_v43 = vsel %vm3742_vm8, %v2749_v11, %v2753_v20  ;;  %v2947_v48 = vrot.slane %v2939_v9, %v3706_v16  ;;  %v2795_v55 = vrot.slane %v2793_v44, 7  ;;  %v2807_v57 = vshll.u32 %v2640_v56, 16  ;;  %v3408_v15 = vld.sshfl [vmem:[%s3704_s4 + $0x44] sm:$0x13 pattern:$0x76325410] }
  0x6f   : > { %3511 = vmatmul.mubr.msk.bf16.gmra.mxu0 %vm650_vm3, %v1731_v45  ;;  %v2940_v47 = vcombine.low %v2754_v43, %v3897_v2  ;;  %v2790_v45 = vor.u32 %v2789_v39, %v2786_v36  ;;  %v2777_v54 = vrot.slane %v2776_v41, 2  ;;  %v2800_v59 = vrot.slane %v2798_v3, 6  ;;  %v3407_v2 = vld.sshfl [vmem:[%s3704_s4 + $0x40] sm:$0x13 pattern:$0x76325410] }
  0x70   : > { %v2803_v62 = vrot.slane %v2801_v49, 7  ;;  %v2809_v1 = vrot.slane %v2807_v57, 7  ;;  %v3409_v25 = vld.sshfl [vmem:[%s3704_s4 + $0x48] sm:$0x13 pattern:$0x76325410]  ;;  %v2656_v27 = vcombine.high %v3407_v2, %v3407_v2  ;;  %v2664_v28 = vcombine.high %v3408_v15, %v3408_v15  ;;  %3526 = vmatprep.mubr.msk.bf16.mxu0 %vm650_vm3, %v2413_v24 }
  0x71   : > { %v2954_v61 = vrot.slane %v2940_v47, %v3706_v16  ;;  %v2791_v30 = vrot.slane %v2790_v45, 2  ;;  %v2782_v63 = vsel %vm3742_vm8, %v2777_v54, %v2781_v26  ;;  %v2430_v7 = vcombine.low %v3620_v50, %v3621_v53  ;;  %v3414_v20 = vld.sshfl [vmem:[%s3704_s4 + $0x60] sm:$0x13 pattern:$0x76325410] }
  0x72   : > { %v2804_v4 = vor.u32 %v2803_v62, %v2800_v59  ;;  %v2672_v8 = vcombine.high %v3409_v25, %v3409_v25  ;;  %v2826_v10 = vshrl.u32 %v3407_v2, 16  ;;  %v2829_v13 = vshll.u32 %v3407_v2, 16  ;;  %v3622_v39 = vld.sshfl [vmem:[%s3704_s4 + $0x40] sm:$0xf pattern:$0x76325410] }
  0x73   : > { %v2955_v5 = vcombine.low %v2947_v48, %v2954_v61  ;;  %v2796_v37 = vsel %vm3742_vm8, %v2791_v30, %v2795_v55  ;;  %v2835_v42 = vshll.u32 %v2656_v27, 16  ;;  %v2840_v14 = vshrl.u32 %v3408_v15, 16  ;;  %v3623_v44 = vld.sshfl [vmem:[%s3704_s4 + $0x48] sm:$0xf pattern:$0x76325410] }
  0x74   : > { %v2956_v52 = vcombine.low %v2782_v63, %v2796_v37  ;;  %v2805_v6 = vrot.slane %v2804_v4, 2  ;;  %v2828_v21 = vrot.slane %v2826_v10, 6  ;;  %v2843_v22 = vshll.u32 %v3408_v15, 16 }
  0x75   : > { %3536 = vmatprep.mubr.msk.bf16.mxu1 %vm650_vm3, %v2955_v5  ;;  %v2849_v33 = vshll.u32 %v2664_v28, 16  ;;  %v2831_v12 = vrot.slane %v2829_v13, 7  ;;  %v2837_v29 = vrot.slane %v2835_v42, 7  ;;  %v2842_v31 = vrot.slane %v2840_v14, 6 }
  0x76   : > { %v2964_v19 = vrot.slane %v2956_v52, %v3706_v16  ;;  %v2810_v56 = vsel %vm3742_vm8, %v2805_v6, %v2809_v1  ;;  %v2845_v32 = vrot.slane %v2843_v22, 7  ;;  %v2854_v11 = vshrl.u32 %v3409_v25, 16  ;;  %v3624_v48 = vld.sshfl [vmem:[%s3704_s4 + $0x54] sm:$0xf pattern:$0x76325410] }
  0x77   : > { %3527 = vmatmul.mubr.msk.bf16.vlgmr.msra.gmra.mxu0 %vm650_vm3, %v2430_v7  ;;  %v2957_v60 = vcombine.low %v2810_v56, %v3929_v23  ;;  %v2851_v34 = vrot.slane %v2849_v33, 7  ;;  %v2857_v35 = vshll.u32 %v3409_v25, 16  ;;  %v2832_v9 = vor.u32 %v2831_v12, %v2828_v21  ;;  %v3625_v55 = vld.sshfl [vmem:[%s3704_s4 + $0x5c] sm:$0xf pattern:$0x76325410] }
  0x78   : > { %v2863_v26 = vshll.u32 %v2672_v8, 16  ;;  %v2712_v36 = vcombine.high %v3414_v20, %v3414_v20  ;;  %v2846_v40 = vor.u32 %v2845_v32, %v2842_v31  ;;  %v2856_v43 = vrot.slane %v2854_v11, 6 }
  0x79   : > { %v2971_v0 = vrot.slane %v2957_v60, %v3706_v16  ;;  %v2859_v41 = vrot.slane %v2857_v35, 7  ;;  %v2924_v23 = vshrl.u32 %v3414_v20, 16  ;;  %v2833_v18 = vrot.slane %v2832_v9, 2 }
  0x7a   : > { %v2865_v50 = vrot.slane %v2863_v26, 7  ;;  %v2927_v47 = vshll.u32 %v3414_v20, 16  ;;  %v2847_v45 = vrot.slane %v2846_v40, 2  ;;  %v2933_v54 = vshll.u32 %v2712_v36, 16 }
  0x7b   : > { %v2972_v3 = vcombine.low %v2964_v19, %v2971_v0  ;;  %v2860_v49 = vor.u32 %v2859_v41, %v2856_v43  ;;  %v2926_v53 = vrot.slane %v2924_v23, 6  ;;  %v2838_v59 = vsel %vm3742_vm8, %v2833_v18, %v2837_v29 }
  0x7c   : > { %v2929_v57 = vrot.slane %v2927_v47, 7  ;;  %v2852_v61 = vsel %vm3742_vm8, %v2847_v45, %v2851_v34  ;;  %v2935_v1 = vrot.slane %v2933_v54, 7  ;;  %v2990_v5 = vcombine.low %v3986_v38, %v3991_v58 }
  0x7d   : > { %3537 = vmatmul.mubr.msk.bf16.vlgmr.msra.gmra.mxu1 %vm650_vm3, %v2972_v3  ;;  %v2861_v30 = vrot.slane %v2860_v49, 2  ;;  %v2973_v62 = vcombine.low %v2838_v59, %v2852_v61  ;;  %v2447_v37 = vcombine.low %v3622_v39, %v3623_v44  ;;  %v2464_v24 = vcombine.low %v3624_v48, %v3625_v55 }
  0x7e   : > { %v2930_v63 = vor.u32 %v2929_v57, %v2926_v53  ;;  %v2998_v6 = vrot.slane %v2990_v5, %v3706_v16 }
  0x7f   : > { %v2866_v2 = vsel %vm3742_vm8, %v2861_v30, %v2865_v50  ;;  %v2981_v15 = vrot.slane %v2973_v62, %v3706_v16  ;;  %3530 = vmatprep.mubr.msk.bf16.mxu0 %vm650_vm3, %v2447_v37 }
  0x80   : > { %v2974_v4 = vcombine.low %v2866_v2, %v3954_v46  ;;  %v2931_v52 = vrot.slane %v2930_v63, 2  ;;  %3531 = vmatmul.mubr.msk.bf16.gmra.mxu0 %vm650_vm3, %v2464_v24 }
  0x82   : > { %v2988_v25 = vrot.slane %v2974_v4, %v3706_v16  ;;  %v2936_v27 = vsel %vm3742_vm8, %v2931_v52, %v2935_v1 }
  0x83   : > { %v2991_v28 = vcombine.low %v4002_v17, %v2936_v27 }
  0x84   : > { %v2989_v38 = vcombine.low %v2981_v15, %v2988_v25 }
  0x85   : > { %v3005_v46 = vrot.slane %v2991_v28, %v3706_v16 }
  0x86   : > { %3540 = vmatprep.mubr.msk.bf16.mxu1 %vm650_vm3, %v2989_v38 }
  0x87   : > { %v3006_v58 = vcombine.low %v2998_v6, %v3005_v46 }
  0x89   : > { %3541 = vmatmul.mubr.msk.bf16.gmra.mxu1 %vm650_vm3, %v3006_v58 }
  0xd7   : > { %v3478_v7 = vpop.f32.mrf.mxu1 }
  0xd9   : > { %v865_v8 = vpop.f32.mrf.mxu1 }
  0xdb   : > { %v3479_v10 = vpop.f32.mrf.mxu1 }
  0xdd   : > { %v868_v51 = vpop.f32.mrf.mxu1 }
  0xee   : > { %v3482_v42 = vpop.f32.mrf.mxu1 }
  0xf0   : > { %v4077_v14 = vpop.f32.mrf.mxu1 }
  0xf2   : > { %v4079_v56 = vpop.f32.mrf.mxu1 }
  0xf4   : > { %v4081_v22 = vpop.f32.mrf.mxu1 }
  0xf8   : > { %v3468_v19 = vpop.f32.mrf.mxu0 }
  0xf9   : > { %v874_v53 = vadd.f32 %v3478_v7, %v3468_v19 }
  0xfa   : > { %v701_v13 = vpop.f32.mrf.mxu0 }
  0xfb   : > { %v866_v59 = vadd.f32 %v865_v8, %v701_v13 }
  0xfc   : > { %v3469_v17 = vpop.f32.mrf.mxu0 }
  0xfd   : > { %v877_v30 = vadd.f32 %v3479_v10, %v3469_v17 }
  0xfe   : > { %v704_v20 = vpop.f32.mrf.mxu0 }
  0xff   : > { %v869_v2 = vadd.f32 %v868_v51, %v704_v20 }
 0x10f   : > { %v3472_v21 = vpop.f32.mrf.mxu0 }
 0x110   : > { %v890_v8 = vadd.f32 %v3482_v42, %v3472_v21 }
 0x111   : > { %v717_v16 = vpop.f32.mrf.mxu0 }
 0x112   : > { %v882_v20 = vadd.f32 %v4077_v14, %v717_v16 }
 0x113   : > { %v3473_v33 = vpop.f32.mrf.mxu0 }
 0x115   : > { %v4083_v12 = vpop.f32.mrf.mxu0 }
 0x116   : > { %v3498_v60 = vpop.f32.mrf.mxu1  ;;  %v885_v14 = vadd.f32 %v4081_v22, %v4083_v12 }
 0x117   : > { %v3488_v31 = vpop.f32.mrf.mxu0 }
 0x118   : > { %v1590_v29 = vpop.f32.mrf.mxu1  ;;  %v1081_v57 = vadd.f32 %v3488_v31, %v874_v53 }
 0x119   : > { %v1048_v34 = vpop.f32.mrf.mxu0 }
 0x11a   : > { %v3499_v32 = vpop.f32.mrf.mxu1  ;;  %v1079_v62 = vadd.f32 %v1048_v34, %v866_v59  ;;  %v1623_v37 = vadd.f32 %v3498_v60, %v1081_v57 }
 0x11b   : > { %v3489_v35 = vpop.f32.mrf.mxu0 }
 0x11c   : > { %v1593_v11 = vpop.f32.mrf.mxu1  ;;  %v1082_v5 = vadd.f32 %v3489_v35, %v877_v30  ;;  %v1621_v24 = vadd.f32 %v1590_v29, %v1079_v62 }
 0x11d   : > { %v1051_v0 = vpop.f32.mrf.mxu0 }
 0x11e   : > { %v3502_v9 = vpop.f32.mrf.mxu1  ;;  %v1080_v15 = vadd.f32 %v1051_v0, %v869_v2  ;;  %v1624_v28 = vadd.f32 %v3499_v32, %v1082_v5  ;;  %v893_v32 = vadd.f32 %v4079_v56, %v3473_v33 }
 0x11f   : > { %v3492_v26 = vpop.f32.mrf.mxu0 }
 0x120   : > { %v4085_v36 = vpop.f32.mrf.mxu1  ;;  %v1622_v46 = vadd.f32 %v1593_v11, %v1080_v15  ;;  %v1085_v60 = vadd.f32 %v3492_v26, %v890_v8  ;;  %v4106_v11 = vld [vmem:[%s4153_s2] ss:$0 sm:$0xff] }
 0x121   : > { %v1064_v39 = vpop.f32.mrf.mxu0 }
 0x122   : > { %v4087_v40 = vpop.f32.mrf.mxu1  ;;  %v1083_v34 = vadd.f32 %v1064_v39, %v882_v20  ;;  %v1627_v26 = vadd.f32 %v3502_v9, %v1085_v60 }
 0x123   : > { %v3493_v43 = vpop.f32.mrf.mxu0 }
 0x124   : > { %v4089_v41 = vpop.f32.mrf.mxu1  ;;  %v1086_v16 = vadd.f32 %v3493_v43, %v893_v32 }
 0x125   : > { %v1067_v23 = vpop.f32.mrf.mxu0 }
 0x126   : > { %v3518_v44 = vpop.f32.mrf.mxu1 }
 0x127   : > { %v3508_v3 = vpop.f32.mrf.mxu0 }
 0x128   : > { %v2323_v18 = vpop.f32.mrf.mxu1  ;;  %v1814_v52 = vadd.f32 %v3508_v3, %v1623_v37 }
 0x129   : > { %v1781_v50 = vpop.f32.mrf.mxu0 }
 0x12a   : > { %v3519_v47 = vpop.f32.mrf.mxu1  ;;  %v1812_v27 = vadd.f32 %v1781_v50, %v1621_v24  ;;  %v2356_v58 = vadd.f32 %v3518_v44, %v1814_v52 }
 0x12b   : > { %v3509_v48 = vpop.f32.mrf.mxu0 }
 0x12c   : > { %v2326_v45 = vpop.f32.mrf.mxu1  ;;  %v1815_v38 = vadd.f32 %v3509_v48, %v1624_v28  ;;  %v2354_v13 = vadd.f32 %v2323_v18, %v1812_v27  ;;  %v1084_v18 = vadd.f32 %v1067_v23, %v885_v14 }
 0x12d   : > { %v1784_v49 = vpop.f32.mrf.mxu0 }
 0x12e   : > { %v4091_v55 = vpop.f32.mrf.mxu1  ;;  %v1813_v19 = vadd.f32 %v1784_v49, %v1622_v46  ;;  %v2357_v31 = vadd.f32 %v3519_v47, %v1815_v38  ;;  %v1625_v47 = vadd.f32 %v4085_v36, %v1083_v34  ;;  %v1626_v30 = vadd.f32 %v4089_v41, %v1084_v18 }
 0x12f   : > { %v3512_v54 = vpop.f32.mrf.mxu0 }
 0x130   : > { %v4093_v1 = vpop.f32.mrf.mxu1  ;;  %v2355_v44 = vadd.f32 %v2326_v45, %v1813_v19  ;;  %v1818_v50 = vadd.f32 %v3512_v54, %v1627_v26  ;;  %v1628_v45 = vadd.f32 %v4087_v40, %v1086_v16 }
 0x131   : > { %v1797_v61 = vpop.f32.mrf.mxu0 }
 0x132   : > { %v4097_v25 = vpop.f32.mrf.mxu1  ;;  %v1816_v43 = vadd.f32 %v1797_v61, %v1625_v47  ;;  %v2360_v62 = vadd.f32 %v4091_v55, %v1818_v50 }
 0x133   : > { %v3513_v63 = vpop.f32.mrf.mxu0 }
 0x134   : > { %v4099_v10 = vpop.f32.mrf.mxu1  ;;  %v1819_v57 = vadd.f32 %v3513_v63, %v1628_v45  ;;  %v2358_v52 = vadd.f32 %v4093_v1, %v1816_v43 }
 0x135   : > { %v4095_v4 = vpop.f32.mrf.mxu0 }
 0x136   : > { %v1817_v37 = vadd.f32 %v4095_v4, %v1626_v30  ;;  %v2361_v27 = vadd.f32 %v4097_v25, %v1819_v57 }
 0x137   : > { %v3528_v6 = vpop.f32.mrf.mxu0 }
 0x138   : > { %v2547_v51 = vadd.f32 %v3528_v6, %v2356_v58  ;;  %v2359_v58 = vadd.f32 %v4099_v10, %v1817_v37 }
 0x139   : > { %v2514_v7 = vpop.f32.mrf.mxu0 }
 0x13a   : > { %v2545_v29 = vadd.f32 %v2514_v7, %v2354_v13 }
 0x13b   : > { %v3529_v17 = vpop.f32.mrf.mxu0 }
 0x13c   : > { %v2548_v0 = vadd.f32 %v3529_v17, %v2357_v31 }
 0x13d   : > { %v3538_v35 = vpop.f32.mrf.mxu1  ;;  %v2517_v42 = vpop.f32.mrf.mxu0 }
 0x13e   : > { %v3089_v21 = vadd.f32 %v3538_v35, %v2547_v51  ;;  %v2546_v39 = vadd.f32 %v2517_v42, %v2355_v44 }
 0x13f   : > { %v3056_v3 = vpop.f32.mrf.mxu1 }
 0x140   : > { %v3104_v56 = vadd.f32 %v4106_v11, %v3089_v21  ;;  %v3087_v33 = vadd.f32 %v3056_v3, %v2545_v29  ;;  %v3532_v59 = vpop.f32.mrf.mxu0 }
 0x141   : > { %v3539_v48 = vpop.f32.mrf.mxu1  ;;  %v2551_v15 = vadd.f32 %v3532_v59, %v2360_v62 }
 0x142   : > { %v3112_v22 = vmax.f32 %v3104_v56, 0.0  ;;  %v3102_v12 = vadd.f32 %v4106_v11, %v3087_v33  ;;  %v3090_v9 = vadd.f32 %v3539_v48, %v2548_v0  ;;  %v2530_v5 = vpop.f32.mrf.mxu0 }
 0x143   : > { %v3059_v23 = vpop.f32.mrf.mxu1  ;;  %v2549_v24 = vadd.f32 %v2530_v5, %v2358_v52 }
 0x144   : > { %v3128_v49 = vcombine.high %v3112_v22, %v3112_v22  ;;  %3146 = vst [vmem:[%s4116_s13 + $0x10] sm:$0xf] %v3112_v22  ;;  %v3110_v36 = vmax.f32 %v3102_v12, 0.0  ;;  %v3105_v53 = vadd.f32 %v4106_v11, %v3090_v9  ;;  %v3088_v54 = vadd.f32 %v3059_v23, %v2546_v39  ;;  %v3533_v55 = vpop.f32.mrf.mxu0 }
 0x145   : > { %v2552_v4 = vadd.f32 %v3533_v55, %v2361_v27 }
 0x146   : > { %3147 = vst [vmem:[%s4116_s13 + $0x14] sm:$0xf] %v3128_v49  ;;  %v3126_v61 = vcombine.high %v3110_v36, %v3110_v36  ;;  %3142 = vst [vmem:[%s4116_s13] sm:$0xf] %v3110_v36  ;;  %v3113_v40 = vmax.f32 %v3105_v53, 0.0  ;;  %v3103_v2 = vadd.f32 %v4106_v11, %v3088_v54  ;;  %v2533_v38 = vpop.f32.mrf.mxu0 }
 0x147   : > { %v2550_v19 = vadd.f32 %v2533_v38, %v2359_v58 }
 0x148   : > { %3143 = vst [vmem:[%s4116_s13 + $0x4] sm:$0xf] %v3126_v61  ;;  %v3129_v63 = vcombine.high %v3113_v40, %v3113_v40  ;;  %3148 = vst [vmem:[%s4116_s13 + $0x18] sm:$0xf] %v3113_v40  ;;  %v3111_v41 = vmax.f32 %v3103_v2, 0.0 }
 0x149   : > { %v3542_v28 = vpop.f32.mrf.mxu1 }
 0x14a   : > { %3149 = vst [vmem:[%s4116_s13 + $0x1c] sm:$0xf] %v3129_v63  ;;  %v3127_v6 = vcombine.high %v3111_v41, %v3111_v41  ;;  %3144 = vst [vmem:[%s4116_s13 + $0x8] sm:$0xf] %v3111_v41  ;;  %v3093_v46 = vadd.f32 %v3542_v28, %v2551_v15 }
 0x14b   : > { %v3072_v1 = vpop.f32.mrf.mxu1 }
 0x14c   : > { %3145 = vst [vmem:[%s4116_s13 + $0xc] sm:$0xf] %v3127_v6  ;;  %v3108_v7 = vadd.f32 %v4106_v11, %v3093_v46  ;;  %v3091_v8 = vadd.f32 %v3072_v1, %v2549_v24 }
 0x14d   : > { %v3543_v25 = vpop.f32.mrf.mxu1 }
 0x14e   : > { %v3116_v51 = vmax.f32 %v3108_v7, 0.0  ;;  %v3106_v13 = vadd.f32 %v4106_v11, %v3091_v8  ;;  %v3094_v17 = vadd.f32 %v3543_v25, %v2552_v4 }
 0x14f   : > { %v3075_v20 = vpop.f32.mrf.mxu1 }
 0x150   : > { %v3132_v60 = vcombine.high %v3116_v51, %v3116_v51  ;;  %3154 = vst [vmem:[%s4116_s13 + $0x30] sm:$0xf] %v3116_v51  ;;  %v3114_v10 = vmax.f32 %v3106_v13, 0.0  ;;  %v3109_v29 = vadd.f32 %v4106_v11, %v3094_v17  ;;  %v3092_v31 = vadd.f32 %v3075_v20, %v2550_v19 }
 0x152   : > { %3155 = vst [vmem:[%s4116_s13 + $0x34] sm:$0xf] %v3132_v60  ;;  %v3130_v32 = vcombine.high %v3114_v10, %v3114_v10  ;;  %3150 = vst [vmem:[%s4116_s13 + $0x20] sm:$0xf] %v3114_v10  ;;  %v3117_v34 = vmax.f32 %v3109_v29, 0.0  ;;  %v3107_v35 = vadd.f32 %v4106_v11, %v3092_v31 }
 0x154   : > { %3151 = vst [vmem:[%s4116_s13 + $0x24] sm:$0xf] %v3130_v32  ;;  %v3133_v42 = vcombine.high %v3117_v34, %v3117_v34  ;;  %3156 = vst [vmem:[%s4116_s13 + $0x38] sm:$0xf] %v3117_v34  ;;  %v3115_v21 = vmax.f32 %v3107_v35, 0.0 }
 0x156   : > { %3157 = vst [vmem:[%s4116_s13 + $0x3c] sm:$0xf] %v3133_v42  ;;  %v3131_v0 = vcombine.high %v3115_v21, %v3115_v21  ;;  %3152 = vst [vmem:[%s4116_s13 + $0x28] sm:$0xf] %v3115_v21 }
 0x158   : > { %3153 = vst [vmem:[%s4116_s13 + $0x2c] sm:$0xf] %v3131_v0 }
 0x159 PF: > { %s13_s12 = sadd.s32 1, %s3632_s12  }
 0x15a   : > { %p10_p4 = scmp.ge.s32.totalorder %s13_s12, 4  }
 0x15c   :  { %12 = sbr.rel (!%p10_p4) target bundleno = 1 (0x1), region = 72 }

</bundles_post_ra>
